<compile_context>
chip_gen: v7x
topology: tpu7x:2x2x1
jax: 0.10.0
libtpu: 0.0.40
codegen_flags: <defaults>
</compile_context>

<pallas_src>
import functools

import jax
import jax.numpy as jnp
from jax.experimental import pallas as pl
from jax.experimental.pallas import tpu as pltpu


# ----------------------------------------------------------------------------
# Tile-size policy.
# ----------------------------------------------------------------------------
def _max_batch_tile():
    """MXU-height batch tile: 256 on v6e/v7x (2x256x256 MXU), 128 on v5e/older."""
    try:
        kind = jax.devices()[0].device_kind.lower()
    except Exception:
        return 128
    if any(v in kind for v in ("v2", "v3", "v4", "v5")):
        return 128
    return 256


# ----------------------------------------------------------------------------
# Pallas kernel: fused net2 (Regressoer) forward for one batch tile.
# ----------------------------------------------------------------------------
def _regressor_kernel(a_ref,            # SMEM (2,)  shared PReLU slopes
                      x_ref,            # (TB, Din)  bf16 input tile
                      w1_ref, sh1_ref,  # (Din, H1)  bf16, (1, H1) f32
                      w2_ref, sh2_ref,  # (H1, H2)   bf16, (1, H2) f32
                      w3_ref, b3_ref,   # vec: (1, H2)/(1, 1); mxu: (H2, Cp)/(1, Cp)
                      o_ref,            # (TB, Cout) f32 output tile
                      *, vec_head):
    # fc1 (eval-mode BN1 scale pre-folded into the bf16 weight columns) + shift.
    h = jnp.dot(x_ref[...], w1_ref[...], preferred_element_type=jnp.float32)
    h = h + sh1_ref[...]
    # PReLU as max(h, a*h): equivalent to where(h>=0, h, a*h) for slope in [0,1].
    h = jnp.maximum(h, a_ref[0] * h)
    # drop1: identity at inference.

    # fc2 (+ folded BN2) + shift + PReLU.
    h = jnp.dot(h.astype(jnp.bfloat16), w2_ref[...],
                preferred_element_type=jnp.float32)
    h = h + sh2_ref[...]
    h = jnp.maximum(h, a_ref[1] * h)
    # drop2: identity at inference.

    # fc3.
    if vec_head:
        # num_classes == 1: VPU multiply + lane reduce against a (1, H2) row;
        # avoids an MXU pass and 128-lane zero-padded weight DMA.
        o = jnp.sum(h * w3_ref[...].astype(jnp.float32), axis=-1, keepdims=True)
    else:
        # General head: lane-dense (multiple-of-128) padded weight on the MXU.
        o = jnp.dot(h.astype(jnp.bfloat16), w3_ref[...],
                    preferred_element_type=jnp.float32)
    o_ref[...] = (o + b3_ref[...]).astype(o_ref.dtype)


@functools.partial(jax.jit, static_argnames=("num_classes",))
def regressor_forward(x, params, *, num_classes):
    """Fused Pallas forward of net2 (eval-mode Regressoer). x: (B, Din)."""
    slopes, w1, sh1, w2, sh2, w3, b3 = params
    B, Din = x.shape
    H1 = w1.shape[1]
    H2 = w2.shape[1]
    vec_head = (num_classes == 1)
    Cout = 1 if vec_head else w3.shape[1]

    # bf16 activations into the kernel (halves the x HBM read).
    x = x.astype(jnp.bfloat16)

    # Batch tiling: fill the MXU height; pad the batch to a multiple of the
    # tile so every grid step is a full, unmasked tile.
    max_tile = _max_batch_tile()
    Bp = ((B + 7) // 8) * 8
    if Bp <= max_tile:
        tile_b = Bp
    else:
        tile_b = max_tile
        Bp = ((Bp + tile_b - 1) // tile_b) * tile_b
    if Bp != B:
        x = jnp.pad(x, ((0, Bp - B), (0, 0)))
    grid = (Bp // tile_b,)

    vmem = pltpu.MemorySpace.VMEM
    smem = pltpu.MemorySpace.SMEM
    # Constant index map -> the pipeline fetches each weight block only once
    # across the whole grid.  (Default double-buffering of these ~1.7 MiB of
    # weights is accepted: total VMEM footprint stays ~4 MiB.)
    const = lambda shape: pl.BlockSpec(shape, lambda i: (0, 0), memory_space=vmem)

    weight_bytes = sum(int(a.size) * a.dtype.itemsize
                       for a in (w1, sh1, w2, sh2, w3, b3))
    cost = pl.CostEstimate(
        flops=2 * Bp * (Din * H1 + H1 * H2 + H2 * Cout),
        transcendentals=0,
        bytes_accessed=weight_bytes + Bp * Din * 2 + Bp * Cout * 4,
    )

    out = pl.pallas_call(
        functools.partial(_regressor_kernel, vec_head=vec_head),
        out_shape=jax.ShapeDtypeStruct((Bp, Cout), jnp.float32),
        grid_spec=pltpu.PrefetchScalarGridSpec(
            num_scalar_prefetch=0,
            grid=grid,
            in_specs=[
                pl.BlockSpec(memory_space=smem),                                   # PReLU slopes
                pl.BlockSpec((tile_b, Din), lambda i: (i, 0), memory_space=vmem),  # x tile (bf16)
                const((Din, H1)), const((1, H1)),                                  # w1', shift1
                const((H1, H2)), const((1, H2)),                                   # w2', shift2
                const(w3.shape), const(b3.shape),                                  # w3, b3
            ],
            out_specs=pl.BlockSpec((tile_b, Cout), lambda i: (i, 0),
                                   memory_space=vmem),
        ),
        compiler_params=pltpu.CompilerParams(
            dimension_semantics=("parallel",),  # v7x megacore shards batch tiles
        ),
        cost_estimate=cost,
    )(slopes, x, w1, sh1, w2, sh2, w3, b3)

    return out[:B, :num_classes]


# ----------------------------------------------------------------------------
# Plain-JAX glue: the Net-level conv pyramid + spatial mean (net1 endpoints in).
# ----------------------------------------------------------------------------
def _conv2d_s2(x, w, b):
    """torch nn.Conv2d(kernel=3, stride=2, padding=1); x NCHW, w OIHW."""
    y = jax.lax.conv_general_dilated(
        x, w, window_strides=(2, 2), padding=((1, 1), (1, 1)),
        dimension_numbers=("NCHW", "OIHW", "NCHW"))
    return y + b[None, :, None, None]


def pyramid_pool(endpoints, conv_params):
    (cw1, cb1), (cw2, cb2), (cw3, cb3), (cw4, cb4) = conv_params
    e0, e1, e2, e3, e4 = endpoints
    a1 = _conv2d_s2(e0, cw1, cb1) + e1
    a2 = _conv2d_s2(a1, cw2, cb2) + e2
    a3 = _conv2d_s2(a2, cw3, cb3) + e3
    a4 = _conv2d_s2(a3, cw4, cb4) + e4
    # Cast to bf16 here so the regressor kernel's activation read is half-width.
    return a4.mean(axis=(2, 3)).astype(jnp.bfloat16)  # (B, 256)


def net_forward(endpoints, conv_params, reg_params, num_classes):
    feat = pyramid_pool(endpoints, conv_params)
    return regressor_forward(feat, reg_params, num_classes=num_classes)


# ----------------------------------------------------------------------------
# Parameters (deterministic, matching module shapes) and pure-JAX reference.
# ----------------------------------------------------------------------------
def make_regressor_params(key, inputsize, num_classes, eps=1e-5):
    H1, H2 = 1024, 512
    k = jax.random.split(key, 8)

    def lin(kw, kb, din, dout):
        w = jax.random.normal(kw, (din, dout), jnp.float32) / jnp.sqrt(din)
        b = 0.01 * jax.random.normal(kb, (dout,), jnp.float32)
        return w, b

    def bn(kk, d):
        kg, kb, km, kv = jax.random.split(kk, 4)
        gamma = 1.0 + 0.1 * jax.random.normal(kg, (d,), jnp.float32)
        beta = 0.1 * jax.random.normal(kb, (d,), jnp.float32)
        mean = 0.1 * jax.random.normal(km, (d,), jnp.float32)
        var = 1.0 + jax.nn.softplus(jax.random.normal(kv, (d,), jnp.float32))
        return gamma, beta, mean, var

    w1, b1 = lin(k[0], k[1], inputsize, H1)
    g1, be1, m1, v1 = bn(k[2], H1)
    w2, b2 = lin(k[3], k[4], H1, H2)
    g2, be2, m2, v2 = bn(k[5], H2)
    w3, b3 = lin(k[6], k[7], H2, num_classes)

    # Fold eval-mode BatchNorm1d into the preceding Linear:
    #   bn(x@W + b) = x @ (W * s) + ((b - mean) * s + beta),  s = gamma/sqrt(var+eps)
    s1 = g1 / jnp.sqrt(v1 + eps)
    s2 = g2 / jnp.sqrt(v2 + eps)
    w1f = (w1 * s1[None, :]).astype(jnp.bfloat16)
    sh1 = ((b1 - m1) * s1 + be1).reshape(1, H1)
    w2f = (w2 * s2[None, :]).astype(jnp.bfloat16)
    sh2 = ((b2 - m2) * s2 + be2).reshape(1, H2)

    if num_classes == 1:
        # VPU-head layout: a single (1, H2) row, no dead 128-lane padding.
        w3k = w3.T.astype(jnp.bfloat16)            # (1, H2)
        b3k = b3.reshape(1, 1)                     # (1, 1)
    else:
        # MXU-head layout: zero-padded to a lane-dense (multiple-of-128) width.
        cpad = ((num_classes + 127) // 128) * 128
        w3p = jnp.zeros((H2, cpad), jnp.float32).at[:, :num_classes].set(w3)
        w3k = w3p.astype(jnp.bfloat16)
        b3k = jnp.zeros((1, cpad), jnp.float32).at[:, :num_classes].set(
            b3.reshape(1, -1))

    # Shared-slope PReLU (torch default init 0.25), both slopes in one SMEM
    # array.  The kernel uses the max(h, a*h) form, which requires a in [0, 1].
    slope = 0.25
    assert 0.0 <= slope <= 1.0, "max-form PReLU requires slope in [0, 1]"
    slopes = jnp.full((2,), slope, jnp.float32)

    return (slopes, w1f, sh1, w2f, sh2, w3k, b3k)


def make_conv_params(key):
    dims = [(24, 48), (48, 64), (64, 160), (160, 256)]
    params = []
    for cin, cout in dims:
        kw, kb, key = jax.random.split(key, 3)
        w = jax.random.normal(kw, (cout, cin, 3, 3), jnp.float32) / jnp.sqrt(cin * 9.0)
        b = 0.01 * jax.random.normal(kb, (cout,), jnp.float32)
        params.append((w, b))
    return params


def regressor_reference(x, params, num_classes):
    """Pure-JAX reference mirroring the kernel's bf16-weight / f32-accum math."""
    slopes, w1, sh1, w2, sh2, w3, b3 = params
    x = x.astype(jnp.bfloat16)
    h = jnp.dot(x, w1, preferred_element_type=jnp.float32) + sh1
    h = jnp.maximum(h, slopes[0] * h)
    h = jnp.dot(h.astype(jnp.bfloat16), w2, preferred_element_type=jnp.float32) + sh2
    h = jnp.maximum(h, slopes[1] * h)
    if num_classes == 1:
        return jnp.sum(h * w3.astype(jnp.float32), axis=-1, keepdims=True) + b3
    o = jnp.dot(h.astype(jnp.bfloat16), w3, preferred_element_type=jnp.float32) + b3
    return o[:, :num_classes]


# ----------------------------------------------------------------------------
# Demo / self-check.
# ----------------------------------------------------------------------------
if __name__ == "__main__":
    B, S, NUM_CLASSES = 2, 16, 1

    key = jax.random.PRNGKey(0)
    k_ep, k_conv, k_reg = jax.random.split(key, 3)

    # Synthetic net1 endpoints (net1 is an external backbone).
    chans = (24, 48, 64, 160, 256)
    sizes = (S, S // 2, S // 4, S // 8, S // 16)
    keps = jax.random.split(k_ep, 5)
    endpoints = tuple(
        jax.random.normal(kk, (B, c, s, s), jnp.float32)
        for kk, c, s in zip(keps, chans, sizes))

    conv_params = make_conv_params(k_conv)
    reg_params = make_regressor_params(k_reg, inputsize=256, num_classes=NUM_CLASSES)

    out = net_forward(endpoints, conv_params, reg_params, NUM_CLASSES)
    out = jax.block_until_ready(out)

    # Reference: identical conv glue + pure-JAX regressor with matched precision.
    feat = pyramid_pool(endpoints, conv_params)
    ref = regressor_reference(feat, reg_params, NUM_CLASSES)

    assert out.shape == (B, NUM_CLASSES), out.shape
    max_err = jnp.max(jnp.abs(out - ref))
    assert jnp.allclose(out, ref, atol=2e-3, rtol=2e-3), f"max err {max_err}"

    print("KERNEL_OK")
</pallas_src>

<mosaic_0001>
module attributes {stable_mosaic.version = 11 : i64} {
  func.func @_regressor_kernel(%arg0: i32, %arg1: memref<2xf32, #tpu.memory_space<smem>>, %arg2: memref<8x256xbf16, #tpu.memory_space<vmem>>, %arg3: memref<256x1024xbf16, #tpu.memory_space<vmem>>, %arg4: memref<1x1024xf32, #tpu.memory_space<vmem>>, %arg5: memref<1024x512xbf16, #tpu.memory_space<vmem>>, %arg6: memref<1x512xf32, #tpu.memory_space<vmem>>, %arg7: memref<1x512xbf16, #tpu.memory_space<vmem>>, %arg8: memref<1x1xf32, #tpu.memory_space<vmem>>, %arg9: memref<8x1xf32, #tpu.memory_space<vmem>>) attributes {dimension_semantics = [#tpu.dimension_semantics<parallel>], iteration_bounds = array<i64: 1>, scalar_prefetch = 0 : i64, scratch_operands = 0 : i64, tpu.core_type = #tpu.core_type<tc>, window_params = [{transform_indices = @transform_0, window_bounds = array<i64: 2>}, {transform_indices = @transform_1, window_bounds = array<i64: 8, 256>}, {pipeline_mode = #tpu.pipeline_mode<synchronous>, transform_indices = @transform_2, window_bounds = array<i64: 256, 1024>}, {pipeline_mode = #tpu.pipeline_mode<synchronous>, transform_indices = @transform_3, window_bounds = array<i64: 1, 1024>}, {pipeline_mode = #tpu.pipeline_mode<synchronous>, transform_indices = @transform_4, window_bounds = array<i64: 1024, 512>}, {pipeline_mode = #tpu.pipeline_mode<synchronous>, transform_indices = @transform_5, window_bounds = array<i64: 1, 512>}, {pipeline_mode = #tpu.pipeline_mode<synchronous>, transform_indices = @transform_6, window_bounds = array<i64: 1, 512>}, {pipeline_mode = #tpu.pipeline_mode<synchronous>, transform_indices = @transform_7, window_bounds = array<i64: 1, 1>}, {transform_indices = @transform_8, window_bounds = array<i64: 8, 1>}]} {
    %c0 = arith.constant 0 : index
    %c0_0 = arith.constant 0 : index
    %0 = vector.load %arg2[%c0, %c0_0] : memref<8x256xbf16, #tpu.memory_space<vmem>>, vector<8x256xbf16>
    %c0_1 = arith.constant 0 : index
    %c0_2 = arith.constant 0 : index
    %1 = vector.load %arg3[%c0_1, %c0_2] : memref<256x1024xbf16, #tpu.memory_space<vmem>>, vector<256x1024xbf16>
    %cst = arith.constant dense<0.000000e+00> : vector<8x1024xf32>
    %2 = tpu.matmul %0, %1, %cst {dimension_numbers = #tpu.dot_dimension_numbers<[1], [0], [0], [1], [0, 0, 1, 1], [], []>} : vector<8x256xbf16>, vector<256x1024xbf16>, vector<8x1024xf32> -> vector<8x1024xf32>
    %c0_3 = arith.constant 0 : index
    %c0_4 = arith.constant 0 : index
    %3 = vector.load %arg4[%c0_3, %c0_4] : memref<1x1024xf32, #tpu.memory_space<vmem>>, vector<1x1024xf32>
    %4 = vector.broadcast %3 : vector<1x1024xf32> to vector<8x1024xf32>
    %5 = arith.addf %2, %4 : vector<8x1024xf32>
    %c0_5 = arith.constant 0 : index
    %6 = memref.load %arg1[%c0_5] : memref<2xf32, #tpu.memory_space<smem>>
    %7 = vector.broadcast %6 : f32 to vector<8x1024xf32>
    %8 = arith.mulf %7, %5 : vector<8x1024xf32>
    %9 = arith.maximumf %5, %8 : vector<8x1024xf32>
    %10 = arith.truncf %9 : vector<8x1024xf32> to vector<8x1024xbf16>
    %c0_6 = arith.constant 0 : index
    %c0_7 = arith.constant 0 : index
    %11 = vector.load %arg5[%c0_6, %c0_7] : memref<1024x512xbf16, #tpu.memory_space<vmem>>, vector<1024x512xbf16>
    %cst_8 = arith.constant dense<0.000000e+00> : vector<8x512xf32>
    %12 = tpu.matmul %10, %11, %cst_8 {dimension_numbers = #tpu.dot_dimension_numbers<[1], [0], [0], [1], [0, 0, 1, 1], [], []>} : vector<8x1024xbf16>, vector<1024x512xbf16>, vector<8x512xf32> -> vector<8x512xf32>
    %c0_9 = arith.constant 0 : index
    %c0_10 = arith.constant 0 : index
    %13 = vector.load %arg6[%c0_9, %c0_10] : memref<1x512xf32, #tpu.memory_space<vmem>>, vector<1x512xf32>
    %14 = vector.broadcast %13 : vector<1x512xf32> to vector<8x512xf32>
    %15 = arith.addf %12, %14 : vector<8x512xf32>
    %c1 = arith.constant 1 : index
    %16 = memref.load %arg1[%c1] : memref<2xf32, #tpu.memory_space<smem>>
    %17 = vector.broadcast %16 : f32 to vector<8x512xf32>
    %18 = arith.mulf %17, %15 : vector<8x512xf32>
    %19 = arith.maximumf %15, %18 : vector<8x512xf32>
    %c0_11 = arith.constant 0 : index
    %c0_12 = arith.constant 0 : index
    %20 = vector.load %arg7[%c0_11, %c0_12] : memref<1x512xbf16, #tpu.memory_space<vmem>>, vector<1x512xbf16>
    %21 = arith.extf %20 : vector<1x512xbf16> to vector<1x512xf32>
    %22 = vector.broadcast %21 : vector<1x512xf32> to vector<8x512xf32>
    %23 = arith.mulf %19, %22 : vector<8x512xf32>
    %cst_13 = arith.constant dense<0.000000e+00> : vector<8xf32>
    %24 = vector.multi_reduction <add>, %23, %cst_13 [1] : vector<8x512xf32> to vector<8xf32>
    %25 = vector.shape_cast %24 : vector<8xf32> to vector<8x1xf32>
    %c0_14 = arith.constant 0 : index
    %c0_15 = arith.constant 0 : index
    %26 = vector.load %arg8[%c0_14, %c0_15] : memref<1x1xf32, #tpu.memory_space<vmem>>, vector<1x1xf32>
    %27 = vector.broadcast %26 : vector<1x1xf32> to vector<8x1xf32>
    %28 = arith.addf %25, %27 : vector<8x1xf32>
    %c0_16 = arith.constant 0 : index
    %c0_17 = arith.constant 0 : index
    %29 = vector.load %arg9[%c0_16, %c0_17] : memref<8x1xf32, #tpu.memory_space<vmem>>, vector<8x1xf32>
    tpu.vector_store %arg9[%c0_16, %c0_17], %28 {strides = array<i32>} : memref<8x1xf32, #tpu.memory_space<vmem>>, vector<8x1xf32>,
    return
  }
  func.func @transform_0(%arg0: i32) -> i32 {
    %c0_i32 = arith.constant 0 : i32
    %c0_i32_0 = arith.constant 0 : i32
    return %c0_i32 : i32
  }
  func.func @transform_1(%arg0: i32) -> (i32, i32) {
    %c0_i32 = arith.constant 0 : i32
    %c0_i32_0 = arith.constant 0 : i32
    return %arg0, %c0_i32 : i32, i32
  }
  func.func @transform_2(%arg0: i32) -> (i32, i32) {
    %c0_i32 = arith.constant 0 : i32
    %c0_i32_0 = arith.constant 0 : i32
    %c0_i32_1 = arith.constant 0 : i32
    return %c0_i32, %c0_i32_0 : i32, i32
  }
  func.func @transform_3(%arg0: i32) -> (i32, i32) {
    %c0_i32 = arith.constant 0 : i32
    %c0_i32_0 = arith.constant 0 : i32
    %c0_i32_1 = arith.constant 0 : i32
    return %c0_i32, %c0_i32_0 : i32, i32
  }
  func.func @transform_4(%arg0: i32) -> (i32, i32) {
    %c0_i32 = arith.constant 0 : i32
    %c0_i32_0 = arith.constant 0 : i32
    %c0_i32_1 = arith.constant 0 : i32
    return %c0_i32, %c0_i32_0 : i32, i32
  }
  func.func @transform_5(%arg0: i32) -> (i32, i32) {
    %c0_i32 = arith.constant 0 : i32
    %c0_i32_0 = arith.constant 0 : i32
    %c0_i32_1 = arith.constant 0 : i32
    return %c0_i32, %c0_i32_0 : i32, i32
  }
  func.func @transform_6(%arg0: i32) -> (i32, i32) {
    %c0_i32 = arith.constant 0 : i32
    %c0_i32_0 = arith.constant 0 : i32
    %c0_i32_1 = arith.constant 0 : i32
    return %c0_i32, %c0_i32_0 : i32, i32
  }
  func.func @transform_7(%arg0: i32) -> (i32, i32) {
    %c0_i32 = arith.constant 0 : i32
    %c0_i32_0 = arith.constant 0 : i32
    %c0_i32_1 = arith.constant 0 : i32
    return %c0_i32, %c0_i32_0 : i32, i32
  }
  func.func @transform_8(%arg0: i32) -> (i32, i32) {
    %c0_i32 = arith.constant 0 : i32
    %c0_i32_0 = arith.constant 0 : i32
    return %arg0, %c0_i32 : i32, i32
  }
}

</mosaic_0001>

<bundles_post_ra>
// kernel: regressor_forward.1
= control target key start
LH: loop header
LB: loop body
LE: loop exit
PB: predicated region body
PF: predicated region fallthrough
CT: control target
= control target key end

     0   :  { %s4099_s0 = inlined_call_operand.vmem [shape: f32[2], index: 0, kind: input, shape index: {}]   ;;  %s4100_s1 = inlined_call_operand.vmem [shape: bf16[8,256], index: 1, kind: input, shape index: {}]   ;;  %s4101_s2 = inlined_call_operand.hbm [shape: bf16[256,1024], index: 2, kind: input, shape index: {}]   ;;  %s4102_s3 = inlined_call_operand.vmem [shape: f32[1,1024], index: 3, kind: input, shape index: {}]   ;;  %s4103_s4 = inlined_call_operand.hbm [shape: bf16[1024,512], index: 4, kind: input, shape index: {}]   ;;  %s4104_s5 = inlined_call_operand.vmem [shape: f32[1,512], index: 5, kind: input, shape index: {}]   ;;  %s4105_s6 = inlined_call_operand.vmem [shape: bf16[1,512], index: 6, kind: input, shape index: {}]   ;;  %s4106_s7 = inlined_call_operand.<no memory space> [shape: f32[1,1], index: 7, kind: input, shape index: {}]   ;;  %s4107_s8 = inlined_call_operand.vmem [shape: f32[8,1], index: 8, kind: output, shape index: {}]  }
   0x1   :  { %v13_v0 = vstv %s4106_s7 }
   0x2   :  { %14 = vst [vmem:[#allocation2] sm:$0x1] %v13_v0 }
   0x3   :  { %15 = vsyncpa [#allocation5], 0 }
   0x4   :  { %16 = vsyncpa [#allocation4], 0  ;;  %s24_s9 = sshll.u32 %s4099_s0, 4  ;;  %s25_s9 = int_to_ptr.vmem [resolvable:$true] %s24_s9 }
   0x5   :  { %17 = vsyncpa [#allocation8], 0  ;;  %s3850_s10 = scalar_lea.vmem %s25_s9, 16  ;;  %p3855_p1 = scmp.lt.s32.totalorder %s25_s9, %s25_s9 }
   0x6   :  { %p3851_p0 = scmp.ne.s32.totalorder %s25_s9, %s3850_s10  ;;  %p3856_p2 = scmp.lt.s32.totalorder %s3850_s10, %s3850_s10 }
   0x8   :  { %p3857_p3 = por %p3856_p2, %p3855_p1 }
   0xa   :  { %p3858_p4 = pnand %p3857_p3, %p3851_p0 }
   0xc   :  { %3861 = shalt.err (!%p3858_p4)
}
   0xd   :  { %s3912_s11 = smov [#allocation3]   ;;  %s3913_s12 = smov [#allocation6]  }
   0xe   :  { %27 = dma.vmem_to_smem %s25_s9, 16, %s3912_s11, [#allocation5]  }
   0xf   :  { %s35_s7 = sshll.u32 %s3913_s12, 4  ;;  %s3862_s15 = scalar_lea.hbm %s4101_s2, 16384  ;;  %s36_s7 = int_to_ptr.vmem [resolvable:$true] %s35_s7 }
  0x10   :  { %p3863_p5 = scmp.ne.s32.totalorder %s4101_s2, %s3862_s15  ;;  %p3866_p6 = scmp.lt.u32.totalorder %s3862_s15, %s4101_s2 }
  0x12   :  { %p3868_p7 = pnand %p3866_p6, %p3863_p5 }
  0x14   :  { %3871 = shalt.err (!%p3868_p7)
}
  0x15   :  { %s3872_s19 = scalar_lea.vmem %s36_s7, 16384  ;;  %p3877_p9 = scmp.lt.s32.totalorder %s36_s7, %s36_s7 }
  0x16   :  { %p3873_p8 = scmp.ne.s32.totalorder %s36_s7, %s3872_s19  ;;  %p3878_p10 = scmp.lt.s32.totalorder %s3872_s19, %s3872_s19 }
  0x18   :  { %p3879_p11 = por %p3878_p10, %p3877_p9 }
  0x1a   :  { %p3880_p12 = pnand %p3879_p11, %p3873_p8 }
  0x1c   :  { %3883 = shalt.err (!%p3880_p12)
}
  0x1d   :  { %s3914_s20 = smov 512   ;;  %s3915_s21 = smov 32  }
  0x1e   :  { %41 = dma.hbm_to_vmem [thread:$0]  %s4101_s2, 16384, %s36_s7, [#allocation4], %s3914_s20, %s3914_s20, %s3915_s21  }
  0x1f   :  { %s3916_s24 = smov [#allocation7]   ;;  %s3884_s28 = scalar_lea.hbm %s4103_s4, 32768 }
  0x20   :  { %s49_s25 = sshll.u32 %s3916_s24, 4  ;;  %p3885_p13 = scmp.ne.s32.totalorder %s4103_s4, %s3884_s28  ;;  %s50_s25 = int_to_ptr.vmem [resolvable:$true] %s49_s25 }
  0x21   :  { %p3888_p0 = scmp.lt.u32.totalorder %s3884_s28, %s4103_s4 }
  0x23   :  { %p3890_p1 = pnand %p3888_p0, %p3885_p13 }
  0x25   :  { %3893 = shalt.err (!%p3890_p1)
}
  0x26   :  { %s3894_s11 = scalar_lea.vmem %s50_s25, 32768  ;;  %p3899_p3 = scmp.lt.s32.totalorder %s50_s25, %s50_s25 }
  0x27   :  { %p3895_p2 = scmp.ne.s32.totalorder %s50_s25, %s3894_s11  ;;  %p3900_p4 = scmp.lt.s32.totalorder %s3894_s11, %s3894_s11 }
  0x29   :  { %p3901_p5 = por %p3900_p4, %p3899_p3 }
  0x2b   :  { %p3902_p6 = pnand %p3901_p5, %p3895_p2 }
  0x2d   :  { %3905 = shalt.err (!%p3902_p6)
}
  0x2e   :  { %s3917_s2 = smov 256   ;;  %s3918_s12 = smov 16  }
  0x2f   :  { %55 = dma.hbm_to_vmem [thread:$0]  %s4103_s4, 32768, %s50_s25, [#allocation8], %s3917_s2, %s3917_s2, %s3918_s12  }
  0x30   :  { %3906 = dma.done.wait [#allocation5], 16  }
  0x31   :  { %3907 = vsyncadd [#allocation5], 4294967280 }
  0x32   :  { %3908 = dma.done.wait [#allocation4], 16384  }
  0x33   :  { %3909 = vsyncadd [#allocation4], 4294950912 }
  0x34   :  { %3910 = dma.done.wait [#allocation8], 32768  }
  0x35   :  { %3911 = vsyncadd [#allocation8], 4294934528 }
  0x36   :  { %71 = sfence }
  0x37   :  { %v73_v1 = vld [vmem:[#allocation6] sm:$0xff]  ;;  %v74_v18 = vld [vmem:[#allocation6 + $0x8] sm:$0xff]  ;;  %s3427_s17 = sld [smem:[#allocation3 + $0x1]]  ;;  %vm3032_vm0 = vcmask 7168  }
  0x38   :  { %v77_v2 = vld [vmem:[#allocation6 + $0x20] sm:$0xff]  ;;  %v78_v19 = vld [vmem:[#allocation6 + $0x28] sm:$0xff] }
  0x39   :  { %v81_v3 = vld [vmem:[#allocation6 + $0x40] sm:$0xff]  ;;  %v3044_v4 = vcombine.high %v73_v1, %v77_v2  ;;  %v3043_v5 = vcombine.low %v73_v1, %v77_v2  ;;  %v82_v21 = vld [vmem:[#allocation6 + $0x48] sm:$0xff]  ;;  %v3046_v23 = vcombine.high %v74_v18, %v78_v19  ;;  %v3045_v24 = vcombine.low %v74_v18, %v78_v19 }
  0x3a   :  { %v85_v6 = vld [vmem:[#allocation6 + $0x60] sm:$0xff]  ;;  %v86_v26 = vld [vmem:[#allocation6 + $0x68] sm:$0xff] }
  0x3b   :  { %v3052_v7 = vcombine.high %v81_v3, %v85_v6  ;;  %v89_v8 = vld [vmem:[#allocation6 + $0x80] sm:$0xff]  ;;  %890 = vmatprep.subr.bf16.mxu0 %v3044_v4  ;;  %v3051_v10 = vcombine.low %v81_v3, %v85_v6  ;;  %v3054_v28 = vcombine.high %v82_v21, %v86_v26  ;;  %v90_v29 = vld [vmem:[#allocation6 + $0x88] sm:$0xff]  ;;  %931 = vmatprep.subr.bf16.mxu1 %v3046_v23 }
  0x3c   :  { %v93_v9 = vld [vmem:[#allocation6 + $0xa0] sm:$0xff]  ;;  %891 = vmatpush1.bf16.msra.mxu0 %v3043_v5  ;;  %v94_v30 = vld [vmem:[#allocation6 + $0xa8] sm:$0xff]  ;;  %932 = vmatpush1.bf16.msra.mxu1 %v3045_v24  ;;  %v3053_v33 = vcombine.low %v82_v21, %v86_v26 }
  0x3d   :  { %892 = vmatprep.subr.bf16.mxu0 %v3052_v7  ;;  %v3060_v11 = vcombine.high %v89_v8, %v93_v9  ;;  %v97_v12 = vld [vmem:[#allocation6 + $0xc0] sm:$0xff]  ;;  %v3059_v14 = vcombine.low %v89_v8, %v93_v9  ;;  %933 = vmatprep.subr.bf16.mxu1 %v3054_v28  ;;  %v3062_v35 = vcombine.high %v90_v29, %v94_v30  ;;  %v98_v37 = vld [vmem:[#allocation6 + $0xc8] sm:$0xff] }
  0x3e   :  { %v101_v13 = vld [vmem:[#allocation6 + $0xe0] sm:$0xff]  ;;  %v102_v38 = vld [vmem:[#allocation6 + $0xe8] sm:$0xff]  ;;  %v3061_v41 = vcombine.low %v90_v29, %v94_v30 }
  0x3f   :  { %v3068_v15 = vcombine.high %v97_v12, %v101_v13  ;;  %v105_v16 = vld [vmem:[#allocation6 + $0x100] sm:$0xff]  ;;  %v3067_v22 = vcombine.low %v97_v12, %v101_v13  ;;  %v3070_v43 = vcombine.high %v98_v37, %v102_v38  ;;  %v106_v45 = vld [vmem:[#allocation6 + $0x108] sm:$0xff]  ;;  %v3069_v49 = vcombine.low %v98_v37, %v102_v38 }
  0x40   :  { %893 = vmatpush1.bf16.msra.mxu0 %v3051_v10  ;;  %v109_v17 = vld [vmem:[#allocation6 + $0x120] sm:$0xff]  ;;  %934 = vmatpush1.bf16.msra.mxu1 %v3053_v33  ;;  %v110_v46 = vld [vmem:[#allocation6 + $0x128] sm:$0xff] }
  0x41   :  { %894 = vmatprep.subr.bf16.mxu0 %v3060_v11  ;;  %v3997_v20 = vld [vmem:[%s4100_s1] sm:$0xff]  ;;  %v3076_v27 = vcombine.high %v105_v16, %v109_v17  ;;  %v3075_v34 = vcombine.low %v105_v16, %v109_v17  ;;  %935 = vmatprep.subr.bf16.mxu1 %v3062_v35  ;;  %v3078_v51 = vcombine.high %v106_v45, %v110_v46  ;;  %v114_v53 = vld [vmem:[#allocation6 + $0x148] sm:$0xff]  ;;  %s1054_s1 = sld [smem:[#allocation3]] }
  0x42   :  { %v4001_v25 = vcombine.high %v3997_v20, %v3997_v20  ;;  %v113_v31 = vld [vmem:[#allocation6 + $0x140] sm:$0xff]  ;;  %v118_v54 = vld [vmem:[#allocation6 + $0x168] sm:$0xff]  ;;  %v3077_v57 = vcombine.low %v106_v45, %v110_v46 }
  0x43   :  { %v117_v32 = vld [vmem:[#allocation6 + $0x160] sm:$0xff]  ;;  %v3086_v59 = vcombine.high %v114_v53, %v118_v54  ;;  %v122_v61 = vld [vmem:[#allocation6 + $0x188] sm:$0xff]  ;;  %v3085_v1 = vcombine.low %v114_v53, %v118_v54 }
  0x44   :  { %895 = vmatpush1.bf16.msra.mxu0 %v3059_v14  ;;  %922 = vmatprep.mubr.bf16.mxu0 %v4001_v25  ;;  %v3084_v36 = vcombine.high %v113_v31, %v117_v32  ;;  %v121_v39 = vld [vmem:[#allocation6 + $0x180] sm:$0xff]  ;;  %v3083_v42 = vcombine.low %v113_v31, %v117_v32  ;;  %v126_v62 = vld [vmem:[#allocation6 + $0x1a8] sm:$0xff] }
  0x45   :  { %896 = vmatprep.subr.bf16.mxu0 %v3068_v15  ;;  %v125_v40 = vld [vmem:[#allocation6 + $0x1a0] sm:$0xff]  ;;  %963 = vmatprep.mubr.bf16.mxu1 %v4001_v25  ;;  %v3094_v3 = vcombine.high %v122_v61, %v126_v62  ;;  %v130_v5 = vld [vmem:[#allocation6 + $0x1c8] sm:$0xff]  ;;  %v3093_v9 = vcombine.low %v122_v61, %v126_v62 }
  0x46   :  { %v3092_v44 = vcombine.high %v121_v39, %v125_v40  ;;  %v129_v47 = vld [vmem:[#allocation6 + $0x1c0] sm:$0xff]  ;;  %936 = vmatpush1.bf16.msra.mxu1 %v3061_v41  ;;  %v3091_v50 = vcombine.low %v121_v39, %v125_v40  ;;  %v134_v6 = vld [vmem:[#allocation6 + $0x1e8] sm:$0xff] }
  0x47   :  { %v133_v48 = vld [vmem:[#allocation6 + $0x1e0] sm:$0xff]  ;;  %937 = vmatprep.subr.bf16.mxu1 %v3070_v43  ;;  %v3102_v11 = vcombine.high %v130_v5, %v134_v6  ;;  %v138_v13 = vld [vmem:[#allocation6 + $0x208] sm:$0xff]  ;;  %v3101_v17 = vcombine.low %v130_v5, %v134_v6 }
  0x48   :  { %897 = vmatpush1.bf16.msra.mxu0 %v3067_v22  ;;  %v3100_v52 = vcombine.high %v129_v47, %v133_v48  ;;  %v137_v55 = vld [vmem:[#allocation6 + $0x200] sm:$0xff]  ;;  %v3099_v58 = vcombine.low %v129_v47, %v133_v48  ;;  %v142_v14 = vld [vmem:[#allocation6 + $0x228] sm:$0xff] }
  0x49   :  { %898 = vmatprep.subr.bf16.mxu0 %v3076_v27  ;;  %v141_v56 = vld [vmem:[#allocation6 + $0x220] sm:$0xff]  ;;  %v3110_v19 = vcombine.high %v138_v13, %v142_v14  ;;  %v146_v22 = vld [vmem:[#allocation6 + $0x248] sm:$0xff]  ;;  %v3109_v27 = vcombine.low %v138_v13, %v142_v14 }
  0x4a   :  { %938 = vmatpush1.bf16.msra.mxu1 %v3069_v49  ;;  %v3108_v60 = vcombine.high %v137_v55, %v141_v56  ;;  %v145_v63 = vld [vmem:[#allocation6 + $0x240] sm:$0xff]  ;;  %v3107_v2 = vcombine.low %v137_v55, %v141_v56  ;;  %v150_v23 = vld [vmem:[#allocation6 + $0x268] sm:$0xff] }
  0x4b   :  { %939 = vmatprep.subr.bf16.mxu1 %v3078_v51  ;;  %v149_v0 = vld [vmem:[#allocation6 + $0x260] sm:$0xff]  ;;  %v3118_v29 = vcombine.high %v146_v22, %v150_v23  ;;  %v154_v31 = vld [vmem:[#allocation6 + $0x288] sm:$0xff]  ;;  %v3117_v35 = vcombine.low %v146_v22, %v150_v23 }
  0x4c   :  { %899 = vmatpush1.bf16.msra.mxu0 %v3075_v34  ;;  %v3116_v4 = vcombine.high %v145_v63, %v149_v0  ;;  %v153_v7 = vld [vmem:[#allocation6 + $0x280] sm:$0xff]  ;;  %v3115_v10 = vcombine.low %v145_v63, %v149_v0  ;;  %v158_v32 = vld [vmem:[#allocation6 + $0x2a8] sm:$0xff] }
  0x4d   :  { %900 = vmatprep.subr.bf16.mxu0 %v3084_v36  ;;  %v157_v8 = vld [vmem:[#allocation6 + $0x2a0] sm:$0xff]  ;;  %v3126_v37 = vcombine.high %v154_v31, %v158_v32  ;;  %v162_v39 = vld [vmem:[#allocation6 + $0x2c8] sm:$0xff]  ;;  %v3125_v43 = vcombine.low %v154_v31, %v158_v32 }
  0x4e   :  { %940 = vmatpush1.bf16.msra.mxu1 %v3077_v57  ;;  %v3124_v12 = vcombine.high %v153_v7, %v157_v8  ;;  %v161_v15 = vld [vmem:[#allocation6 + $0x2c0] sm:$0xff]  ;;  %v3123_v18 = vcombine.low %v153_v7, %v157_v8  ;;  %v166_v40 = vld [vmem:[#allocation6 + $0x2e8] sm:$0xff]  ;;  %v75_v57 = vld [vmem:[#allocation6 + $0x10] sm:$0xff] }
  0x4f   :  { %941 = vmatprep.subr.bf16.mxu1 %v3086_v59  ;;  %v165_v16 = vld [vmem:[#allocation6 + $0x2e0] sm:$0xff]  ;;  %v3134_v45 = vcombine.high %v162_v39, %v166_v40  ;;  %v170_v47 = vld [vmem:[#allocation6 + $0x308] sm:$0xff]  ;;  %v3133_v51 = vcombine.low %v162_v39, %v166_v40  ;;  %v123_v39 = vld [vmem:[#allocation6 + $0x190] sm:$0xff] }
  0x50   :  { %901 = vmatpush1.bf16.msra.mxu0 %v3083_v42  ;;  %v3132_v21 = vcombine.high %v161_v15, %v165_v16  ;;  %v169_v24 = vld [vmem:[#allocation6 + $0x300] sm:$0xff]  ;;  %v3131_v28 = vcombine.low %v161_v15, %v165_v16  ;;  %v174_v48 = vld [vmem:[#allocation6 + $0x328] sm:$0xff]  ;;  %v76_v15 = vld [vmem:[#allocation6 + $0x18] sm:$0xff] }
  0x51   :  { %902 = vmatprep.subr.bf16.mxu0 %v3092_v44  ;;  %v173_v26 = vld [vmem:[#allocation6 + $0x320] sm:$0xff]  ;;  %v3142_v53 = vcombine.high %v170_v47, %v174_v48  ;;  %v178_v55 = vld [vmem:[#allocation6 + $0x348] sm:$0xff]  ;;  %v3141_v59 = vcombine.low %v170_v47, %v174_v48  ;;  %v80_v16 = vld [vmem:[#allocation6 + $0x38] sm:$0xff] }
  0x52   :  { %942 = vmatpush1.bf16.msra.mxu1 %v3085_v1  ;;  %v3140_v30 = vcombine.high %v169_v24, %v173_v26  ;;  %v177_v33 = vld [vmem:[#allocation6 + $0x340] sm:$0xff]  ;;  %v3139_v36 = vcombine.low %v169_v24, %v173_v26  ;;  %v182_v56 = vld [vmem:[#allocation6 + $0x368] sm:$0xff]  ;;  %v83_v1 = vld [vmem:[#allocation6 + $0x50] sm:$0xff]  ;;  %v3050_v22 = vcombine.high %v76_v15, %v80_v16 }
  0x53   :  { %943 = vmatprep.subr.bf16.mxu1 %v3094_v3  ;;  %v181_v34 = vld [vmem:[#allocation6 + $0x360] sm:$0xff]  ;;  %v3150_v61 = vcombine.high %v178_v55, %v182_v56  ;;  %v186_v62 = vld [vmem:[#allocation6 + $0x388] sm:$0xff]  ;;  %v4007_v3 = vcombine.low %v3997_v20, %v3997_v20  ;;  %v84_v24 = vld [vmem:[#allocation6 + $0x58] sm:$0xff] }
  0x54   :  { %903 = vmatpush1.bf16.msra.mxu0 %v3091_v50  ;;  %v3148_v38 = vcombine.high %v177_v33, %v181_v34  ;;  %v185_v41 = vld [vmem:[#allocation6 + $0x380] sm:$0xff]  ;;  %v3147_v44 = vcombine.low %v177_v33, %v181_v34  ;;  %v190_v63 = vld [vmem:[#allocation6 + $0x3a8] sm:$0xff]  ;;  %v88_v26 = vld [vmem:[#allocation6 + $0x78] sm:$0xff] }
  0x55   :  { %904 = vmatprep.subr.bf16.mxu0 %v3100_v52  ;;  %v189_v42 = vld [vmem:[#allocation6 + $0x3a0] sm:$0xff]  ;;  %v3158_v5 = vcombine.high %v186_v62, %v190_v63  ;;  %v194_v7 = vld [vmem:[#allocation6 + $0x3c8] sm:$0xff]  ;;  %v3058_v31 = vcombine.high %v84_v24, %v88_v26  ;;  %v92_v33 = vld [vmem:[#allocation6 + $0x98] sm:$0xff] }
  0x56   :  { %944 = vmatpush1.bf16.msra.mxu1 %v3093_v9  ;;  %v3156_v46 = vcombine.high %v185_v41, %v189_v42  ;;  %v193_v49 = vld [vmem:[#allocation6 + $0x3c0] sm:$0xff]  ;;  %v3155_v52 = vcombine.low %v185_v41, %v189_v42  ;;  %v198_v8 = vld [vmem:[#allocation6 + $0x3e8] sm:$0xff]  ;;  %v96_v34 = vld [vmem:[#allocation6 + $0xb8] sm:$0xff] }
  0x57   :  { %945 = vmatprep.subr.bf16.mxu1 %v3102_v11  ;;  %v197_v50 = vld [vmem:[#allocation6 + $0x3e0] sm:$0xff]  ;;  %v95_v11 = vld [vmem:[#allocation6 + $0xb0] sm:$0xff]  ;;  %v3166_v13 = vcombine.high %v194_v7, %v198_v8  ;;  %v3066_v41 = vcombine.high %v92_v33, %v96_v34  ;;  %v100_v42 = vld [vmem:[#allocation6 + $0xd8] sm:$0xff] }
  0x58   :  { %905 = vmatpush1.bf16.msra.mxu0 %v3099_v58  ;;  %v3164_v54 = vcombine.high %v193_v49, %v197_v50  ;;  %v79_v58 = vld [vmem:[#allocation6 + $0x30] sm:$0xff]  ;;  %v112_v47 = vld [vmem:[#allocation6 + $0x138] sm:$0xff] }
  0x59   :  { %906 = vmatprep.subr.bf16.mxu0 %v3108_v60  ;;  %v3163_v60 = vcombine.low %v193_v49, %v197_v50  ;;  %v3048_v0 = vcombine.high %v75_v57, %v79_v58  ;;  %v3047_v6 = vcombine.low %v75_v57, %v79_v58  ;;  %v127_v40 = vld [vmem:[#allocation6 + $0x1b0] sm:$0xff] }
  0x5a   :  { %946 = vmatpush1.bf16.msra.mxu1 %v3101_v17  ;;  %v99_v17 = vld [vmem:[#allocation6 + $0xd0] sm:$0xff] }
  0x5b   :  { %947 = vmatprep.subr.bf16.mxu1 %v3110_v19  ;;  %v3165_v19 = vcombine.low %v194_v7, %v198_v8  ;;  %v131_v49 = vld [vmem:[#allocation6 + $0x1d0] sm:$0xff]  ;;  %v136_v7 = vld [vmem:[#allocation6 + $0x1f8] sm:$0xff] }
  0x5c   :  { %907 = vmatpush1.bf16.msra.mxu0 %v3107_v2  ;;  %v87_v2 = vld [vmem:[#allocation6 + $0x70] sm:$0xff] }
  0x5d   :  { %908 = vmatprep.subr.bf16.mxu0 %v3116_v4  ;;  %v3149_v4 = vcombine.low %v178_v55, %v182_v56  ;;  %v3056_v9 = vcombine.high %v83_v1, %v87_v2  ;;  %v3055_v20 = vcombine.low %v83_v1, %v87_v2  ;;  %v135_v50 = vld [vmem:[#allocation6 + $0x1f0] sm:$0xff]  ;;  %v3095_v55 = vcombine.low %v123_v39, %v127_v40 }
  0x5e   :  { %948 = vmatpush1.bf16.msra.mxu1 %v3109_v27  ;;  %v107_v27 = vld [vmem:[#allocation6 + $0x110] sm:$0xff] }
  0x5f   :  { %949 = vmatprep.subr.bf16.mxu1 %v3118_v29  ;;  %v3049_v29 = vcombine.low %v76_v15, %v80_v16  ;;  %v139_v56 = vld [vmem:[#allocation6 + $0x210] sm:$0xff] }
  0x60   :  { %909 = vmatpush1.bf16.msra.mxu0 %v3115_v10  ;;  %v91_v10 = vld [vmem:[#allocation6 + $0x90] sm:$0xff] }
  0x61   :  { %910 = vmatprep.subr.bf16.mxu0 %v3124_v12  ;;  %v3157_v12 = vcombine.low %v186_v62, %v190_v63  ;;  %v3064_v14 = vcombine.high %v91_v10, %v95_v11  ;;  %v143_v57 = vld [vmem:[#allocation6 + $0x230] sm:$0xff]  ;;  %v128_v62 = vld [vmem:[#allocation6 + $0x1b8] sm:$0xff]  ;;  %v3103_v63 = vcombine.low %v131_v49, %v135_v50 }
  0x62   :  { %950 = vmatpush1.bf16.msra.mxu1 %v3117_v35  ;;  %v115_v35 = vld [vmem:[#allocation6 + $0x150] sm:$0xff]  ;;  %v3111_v8 = vcombine.low %v139_v56, %v143_v57 }
  0x63   :  { %951 = vmatprep.subr.bf16.mxu1 %v3126_v37  ;;  %v3057_v37 = vcombine.low %v84_v24, %v88_v26  ;;  %v151_v1 = vld [vmem:[#allocation6 + $0x270] sm:$0xff] }
  0x64   :  { %911 = vmatpush1.bf16.msra.mxu0 %v3123_v18  ;;  %v103_v18 = vld [vmem:[#allocation6 + $0xf0] sm:$0xff] }
  0x65   :  { %912 = vmatprep.subr.bf16.mxu0 %v3132_v21  ;;  %v3063_v21 = vcombine.low %v91_v10, %v95_v11  ;;  %v3072_v23 = vcombine.high %v99_v17, %v103_v18  ;;  %v159_v10 = vld [vmem:[#allocation6 + $0x2b0] sm:$0xff] }
  0x66   :  { %952 = vmatpush1.bf16.msra.mxu1 %v3125_v43  ;;  %v104_v43 = vld [vmem:[#allocation6 + $0xf8] sm:$0xff]  ;;  %v163_v16 = vld [vmem:[#allocation6 + $0x2d0] sm:$0xff] }
  0x67   :  { %953 = vmatprep.subr.bf16.mxu1 %v3134_v45  ;;  %v3065_v45 = vcombine.low %v92_v33, %v96_v34  ;;  %v171_v26 = vld [vmem:[#allocation6 + $0x310] sm:$0xff] }
  0x68   :  { %913 = vmatpush1.bf16.msra.mxu0 %v3131_v28  ;;  %v111_v28 = vld [vmem:[#allocation6 + $0x130] sm:$0xff] }
  0x69   :  { %914 = vmatprep.subr.bf16.mxu0 %v3140_v30  ;;  %v3071_v30 = vcombine.low %v99_v17, %v103_v18  ;;  %v3080_v32 = vcombine.high %v107_v27, %v111_v28  ;;  %v167_v17 = vld [vmem:[#allocation6 + $0x2f0] sm:$0xff] }
  0x6a   :  { %954 = vmatpush1.bf16.msra.mxu1 %v3133_v51  ;;  %v3096_v51 = vcombine.high %v123_v39, %v127_v40  ;;  %v3135_v33 = vcombine.low %v163_v16, %v167_v17  ;;  %v179_v34 = vld [vmem:[#allocation6 + $0x350] sm:$0xff]  ;;  %v164_v39 = vld [vmem:[#allocation6 + $0x2d8] sm:$0xff] }
  0x6b   :  { %955 = vmatprep.subr.bf16.mxu1 %v3142_v53  ;;  %v116_v53 = vld [vmem:[#allocation6 + $0x158] sm:$0xff] }
  0x6c   :  { %915 = vmatpush1.bf16.msra.mxu0 %v3139_v36  ;;  %v119_v36 = vld [vmem:[#allocation6 + $0x170] sm:$0xff]  ;;  %v168_v40 = vld [vmem:[#allocation6 + $0x2f8] sm:$0xff] }
  0x6d   :  { %916 = vmatprep.subr.bf16.mxu0 %v3148_v38  ;;  %v3079_v38 = vcombine.low %v107_v27, %v111_v28  ;;  %v3087_v48 = vcombine.low %v115_v35, %v119_v36  ;;  %v175_v27 = vld [vmem:[#allocation6 + $0x330] sm:$0xff] }
  0x6e   :  { %956 = vmatpush1.bf16.msra.mxu1 %v3141_v59  ;;  %v3104_v59 = vcombine.high %v131_v49, %v135_v50  ;;  %v195_v50 = vld [vmem:[#allocation6 + $0x3d0] sm:$0xff] }
  0x6f   :  { %957 = vmatprep.subr.bf16.mxu1 %v3150_v61  ;;  %v124_v61 = vld [vmem:[#allocation6 + $0x198] sm:$0xff] }
  0x70   :  { %917 = vmatpush1.bf16.msra.mxu0 %v3147_v44  ;;  %v3088_v44 = vcombine.high %v115_v35, %v119_v36  ;;  %v3098_v11 = vcombine.high %v124_v61, %v128_v62  ;;  %v183_v35 = vld [vmem:[#allocation6 + $0x370] sm:$0xff] }
  0x71   :  { %918 = vmatprep.subr.bf16.mxu0 %v3156_v46  ;;  %v108_v46 = vld [vmem:[#allocation6 + $0x118] sm:$0xff]  ;;  %v3151_v49 = vcombine.low %v179_v34, %v183_v35 }
  0x72   :  { %958 = vmatpush1.bf16.msra.mxu1 %v3149_v4  ;;  %v3082_v58 = vcombine.high %v108_v46, %v112_v47  ;;  %v3112_v4 = vcombine.high %v139_v56, %v143_v57 }
  0x73   :  { %959 = vmatprep.subr.bf16.mxu1 %v3158_v5 }
  0x74   :  { %919 = vmatpush1.bf16.msra.mxu0 %v3155_v52  ;;  %v3073_v52 = vcombine.low %v100_v42, %v104_v43 }
  0x75   :  { %920 = vmatprep.subr.bf16.mxu0 %v3164_v54  ;;  %v120_v54 = vld [vmem:[#allocation6 + $0x178] sm:$0xff] }
  0x76   :  { %960 = vmatpush1.bf16.msra.mxu1 %v3157_v12  ;;  %v3090_v2 = vcombine.high %v116_v53, %v120_v54  ;;  %v3089_v5 = vcombine.low %v116_v53, %v120_v54  ;;  %v3137_v53 = vcombine.low %v164_v39, %v168_v40  ;;  %v180_v54 = vld [vmem:[#allocation6 + $0x358] sm:$0xff] }
  0x77   :  { %961 = vmatprep.subr.bf16.mxu1 %v3166_v13  ;;  %v3097_v13 = vcombine.low %v124_v61, %v128_v62  ;;  %v192_v61 = vld [vmem:[#allocation6 + $0x3b8] sm:$0xff]  ;;  %v3468_v62 = vld [vmem:[#allocation7 + $0x4] ss:$16 sps:$4 sm:$0xff]  }
  0x78   :  { %921 = vmatpush1.bf16.msra.mxu0 %v3163_v60  ;;  %v3081_v60 = vcombine.low %v108_v46, %v112_v47  ;;  %v172_v47 = vld [vmem:[#allocation6 + $0x318] sm:$0xff] }
  0x79   :  { %972 = vmatprep.subr.bf16.mxu0 %v3048_v0  ;;  %v147_v0 = vld [vmem:[#allocation6 + $0x250] sm:$0xff] }
  0x7a   :  { %962 = vmatpush1.bf16.msra.mxu1 %v3165_v19  ;;  %v3120_v12 = vcombine.high %v147_v0, %v151_v1  ;;  %v3119_v15 = vcombine.low %v147_v0, %v151_v1  ;;  %v3466_v1 = vld [vmem:[#allocation7] ss:$16 sps:$4 sm:$0xff]  }
  0x7b   :  { %923 = vmatmul.mubr.bf16.vlgmr.msra.gmra.mrb[0].mxu0 %v4007_v3  ;;  %1013 = vmatprep.subr.bf16.mxu1 %v3050_v22  ;;  %v148_v22 = vld [vmem:[#allocation6 + $0x258] sm:$0xff] }
  0x7c   :  { %973 = vmatpush1.bf16.msra.mxu0 %v3047_v6  ;;  %1004 = vmatprep.mubr.bf16.mxu0 %v4001_v25  ;;  %v132_v6 = vld [vmem:[#allocation6 + $0x1d8] sm:$0xff] }
  0x7d   :  { %974 = vmatprep.subr.bf16.mxu0 %v3056_v9  ;;  %964 = vmatmul.mubr.bf16.vlgmr.msra.gmra.mrb[0].mxu1 %v4007_v3  ;;  %v155_v9 = vld [vmem:[#allocation6 + $0x290] sm:$0xff]  ;;  %v3106_v18 = vcombine.high %v132_v6, %v136_v7 }
  0x7e   :  { %1014 = vmatpush1.bf16.msra.mxu1 %v3049_v29  ;;  %1045 = vmatprep.mubr.bf16.mxu1 %v4001_v25  ;;  %v3074_v25 = vcombine.high %v100_v42, %v104_v43  ;;  %v3128_v19 = vcombine.high %v155_v9, %v159_v10  ;;  %v3127_v24 = vcombine.low %v155_v9, %v159_v10  ;;  %v187_v42 = vld [vmem:[#allocation6 + $0x390] sm:$0xff] }
  0x7f   :  { %1015 = vmatprep.subr.bf16.mxu1 %v3058_v31  ;;  %v3136_v29 = vcombine.high %v163_v16, %v167_v17  ;;  %v156_v31 = vld [vmem:[#allocation6 + $0x298] sm:$0xff]  ;;  %v191_v43 = vld [vmem:[#allocation6 + $0x3b0] sm:$0xff] }
  0x80   :  { %975 = vmatpush1.bf16.msra.mxu0 %v3055_v20  ;;  %v140_v20 = vld [vmem:[#allocation6 + $0x218] sm:$0xff]  ;;  %v3159_v56 = vcombine.low %v187_v42, %v191_v43  ;;  %v3480_v10 = vld [vmem:[#allocation7 + $0x44] ss:$16 sps:$4 sm:$0xff]   ;;  %v3484_v17 = vld [vmem:[#allocation7 + $0x60] ss:$16 sps:$4 sm:$0xff]  }
  0x81   :  { %976 = vmatprep.subr.bf16.mxu0 %v3064_v14  ;;  %v144_v14 = vld [vmem:[#allocation6 + $0x238] sm:$0xff] }
  0x82   :  { %1016 = vmatpush1.bf16.msra.mxu1 %v3057_v37  ;;  %v3114_v28 = vcombine.high %v140_v20, %v144_v14  ;;  %v3144_v37 = vcombine.high %v171_v26, %v175_v27  ;;  %v3477_v16 = vld [vmem:[#allocation7 + $0x2c] ss:$16 sps:$4 sm:$0xff]  }
  0x83   :  { %1017 = vmatprep.subr.bf16.mxu1 %v3066_v41  ;;  %v3143_v41 = vcombine.low %v171_v26, %v175_v27  ;;  %v3489_v26 = vld [vmem:[#allocation7 + $0x6c] ss:$16 sps:$4 sm:$0xff]   ;;  %v3496_v27 = vld [vmem:[#allocation7 + $0xa0] ss:$16 sps:$4 sm:$0xff]  }
  0x84   :  { %977 = vmatpush1.bf16.msra.mxu0 %v3063_v21  ;;  %v3105_v21 = vcombine.low %v132_v6, %v136_v7  ;;  %v3474_v6 = vld [vmem:[#allocation7 + $0x24] ss:$16 sps:$4 sm:$0xff]  }
  0x85   :  { %978 = vmatprep.subr.bf16.mxu0 %v3072_v23  ;;  %v152_v23 = vld [vmem:[#allocation6 + $0x278] sm:$0xff] }
  0x86   :  { %1018 = vmatpush1.bf16.msra.mxu1 %v3065_v45  ;;  %v3122_v36 = vcombine.high %v148_v22, %v152_v23  ;;  %v3152_v45 = vcombine.high %v179_v34, %v183_v35  ;;  %v3508_v34 = vld [vmem:[#allocation7 + $0xe0] ss:$16 sps:$4 sm:$0xff]   ;;  %v3516_v35 = vld [vmem:[#allocation7 + $0x104] ss:$16 sps:$4 sm:$0xff]  }
  0x87   :  { %1019 = vmatprep.subr.bf16.mxu1 %v3074_v25  ;;  %v199_v25 = vld [vmem:[#allocation6 + $0x3f0] sm:$0xff] }
  0x88   :  { %979 = vmatpush1.bf16.msra.mxu0 %v3071_v30  ;;  %v3113_v30 = vcombine.low %v140_v20, %v144_v14  ;;  %v3486_v14 = vld [vmem:[#allocation7 + $0x64] ss:$16 sps:$4 sm:$0xff]  }
  0x89   :  { %980 = vmatprep.subr.bf16.mxu0 %v3080_v32  ;;  %v160_v32 = vld [vmem:[#allocation6 + $0x2b8] sm:$0xff] }
  0x8a   :  { %1020 = vmatpush1.bf16.msra.mxu1 %v3073_v52  ;;  %v3129_v46 = vcombine.low %v156_v31, %v160_v32  ;;  %v3160_v52 = vcombine.high %v187_v42, %v191_v43  ;;  %v3520_v42 = vld [vmem:[#allocation7 + $0x120] ss:$16 sps:$4 sm:$0xff]   ;;  %v3528_v43 = vld [vmem:[#allocation7 + $0x144] ss:$16 sps:$4 sm:$0xff]  }
  0x8b   :  { %1021 = vmatprep.subr.bf16.mxu1 %v3082_v58  ;;  %v3168_v58 = vcombine.high %v195_v50, %v199_v25 }
  0x8c   :  { %981 = vmatpush1.bf16.msra.mxu0 %v3079_v38  ;;  %v3121_v38 = vcombine.low %v148_v22, %v152_v23  ;;  %v3490_v22 = vld [vmem:[#allocation7 + $0x80] ss:$16 sps:$4 sm:$0xff]   ;;  %v3498_v23 = vld [vmem:[#allocation7 + $0xa4] ss:$16 sps:$4 sm:$0xff]  }
  0x8d   :  { %982 = vmatprep.subr.bf16.mxu0 %v3088_v44  ;;  %v3130_v44 = vcombine.high %v156_v31, %v160_v32  ;;  %v3510_v31 = vld [vmem:[#allocation7 + $0xe4] ss:$16 sps:$4 sm:$0xff]   ;;  %v3493_v32 = vld [vmem:[#allocation7 + $0x88] ss:$16 sps:$4 sm:$0xff]  }
  0x8e   :  { %1022 = vmatpush1.bf16.msra.mxu1 %v3081_v60  ;;  %v188_v60 = vld [vmem:[#allocation6 + $0x398] sm:$0xff] }
  0x8f   :  { %1023 = vmatprep.subr.bf16.mxu1 %v3090_v2  ;;  %v3162_v7 = vcombine.high %v188_v60, %v192_v61  ;;  %v3161_v9 = vcombine.low %v188_v60, %v192_v61  ;;  %v3543_v60 = vld [vmem:[#allocation7 + $0x18c] ss:$16 sps:$4 sm:$0xff]   ;;  %v3550_v61 = vld [vmem:[#allocation7 + $0x1c0] ss:$16 sps:$4 sm:$0xff]  }
  0x90   :  { %983 = vmatpush1.bf16.msra.mxu0 %v3087_v48  ;;  %v176_v48 = vld [vmem:[#allocation6 + $0x338] sm:$0xff] }
  0x91   :  { %984 = vmatprep.subr.bf16.mxu0 %v3096_v51  ;;  %v3138_v51 = vcombine.high %v164_v39, %v168_v40  ;;  %v3146_v57 = vcombine.high %v172_v47, %v176_v48  ;;  %v3522_v39 = vld [vmem:[#allocation7 + $0x124] ss:$16 sps:$4 sm:$0xff]   ;;  %v3505_v40 = vld [vmem:[#allocation7 + $0xc8] ss:$16 sps:$4 sm:$0xff]  }
  0x92   :  { %1024 = vmatpush1.bf16.msra.mxu1 %v3089_v5  ;;  %v200_v5 = vld [vmem:[#allocation6 + $0x3f8] sm:$0xff] }
  0x93   :  { %1025 = vmatprep.subr.bf16.mxu1 %v3098_v11 }
  0x94   :  { %985 = vmatpush1.bf16.msra.mxu0 %v3095_v55  ;;  %v184_v55 = vld [vmem:[#allocation6 + $0x378] sm:$0xff] }
  0x95   :  { %986 = vmatprep.subr.bf16.mxu0 %v3104_v59  ;;  %v3145_v59 = vcombine.low %v172_v47, %v176_v48  ;;  %v3154_v0 = vcombine.high %v180_v54, %v184_v55  ;;  %v3153_v2 = vcombine.low %v180_v54, %v184_v55  ;;  %v3534_v47 = vld [vmem:[#allocation7 + $0x164] ss:$16 sps:$4 sm:$0xff]   ;;  %v3517_v48 = vld [vmem:[#allocation7 + $0x108] ss:$16 sps:$4 sm:$0xff]  }
  0x96   :  { %1026 = vmatpush1.bf16.msra.mxu1 %v3097_v13  ;;  %v3478_v13 = vld [vmem:[#allocation7 + $0x40] ss:$16 sps:$4 sm:$0xff]   ;;  %v3546_v54 = vld [vmem:[#allocation7 + $0x1a4] ss:$16 sps:$4 sm:$0xff]   ;;  %v3529_v55 = vld [vmem:[#allocation7 + $0x148] ss:$16 sps:$4 sm:$0xff]  }
  0x97   :  { %1027 = vmatprep.subr.bf16.mxu1 %v3106_v18  ;;  %v3492_v18 = vld [vmem:[#allocation7 + $0x84] ss:$16 sps:$4 sm:$0xff]  }
  0x98   :  { %987 = vmatpush1.bf16.msra.mxu0 %v3103_v63  ;;  %v3167_v63 = vcombine.low %v195_v50, %v199_v25  ;;  %v3532_v50 = vld [vmem:[#allocation7 + $0x160] ss:$16 sps:$4 sm:$0xff]   ;;  %v3540_v25 = vld [vmem:[#allocation7 + $0x184] ss:$16 sps:$4 sm:$0xff]  }
  0x99   :  { %988 = vmatprep.subr.bf16.mxu0 %v3112_v4  ;;  %v196_v4 = vld [vmem:[#allocation6 + $0x3d8] sm:$0xff] }
  0x9a   :  { %1028 = vmatpush1.bf16.msra.mxu1 %v3105_v21  ;;  %v3170_v11 = vcombine.high %v196_v4, %v200_v5  ;;  %v3169_v20 = vcombine.low %v196_v4, %v200_v5  ;;  %v3483_v21 = vld [vmem:[#allocation7 + $0x4c] ss:$16 sps:$4 sm:$0xff]   ;;  %v3547_v4 = vld [vmem:[#allocation7 + $0x1a8] ss:$16 sps:$4 sm:$0xff]  }
  0x9b   :  { %1029 = vmatprep.subr.bf16.mxu1 %v3114_v28  ;;  %v3504_v28 = vld [vmem:[#allocation7 + $0xc4] ss:$16 sps:$4 sm:$0xff]   ;;  %v3555_v5 = vld [vmem:[#allocation7 + $0x1cc] ss:$16 sps:$4 sm:$0xff]  }
  0x9c   :  { %989 = vmatpush1.bf16.msra.mxu0 %v3111_v8  ;;  %v3472_v8 = vld [vmem:[#allocation7 + $0x20] ss:$16 sps:$4 sm:$0xff]  }
  0x9d   :  { %990 = vmatprep.subr.bf16.mxu0 %v3120_v12  ;;  %v3471_v12 = vld [vmem:[#allocation7 + $0xc] ss:$16 sps:$4 sm:$0xff]  }
  0x9e   :  { %1030 = vmatpush1.bf16.msra.mxu1 %v3113_v30  ;;  %v3495_v30 = vld [vmem:[#allocation7 + $0x8c] ss:$16 sps:$4 sm:$0xff]  }
  0x9f   :  { %1031 = vmatprep.subr.bf16.mxu1 %v3122_v36  ;;  %v3499_v36 = vld [vmem:[#allocation7 + $0xa8] ss:$16 sps:$4 sm:$0xff]  }
  0xa0   :  { %991 = vmatpush1.bf16.msra.mxu0 %v3119_v15  ;;  %v3469_v15 = vld [vmem:[#allocation7 + $0x8] ss:$16 sps:$4 sm:$0xff]  }
  0xa1   :  { %992 = vmatprep.subr.bf16.mxu0 %v3128_v19  ;;  %v3475_v19 = vld [vmem:[#allocation7 + $0x28] ss:$16 sps:$4 sm:$0xff]  }
  0xa2   :  { %1032 = vmatpush1.bf16.msra.mxu1 %v3121_v38  ;;  %v3514_v38 = vld [vmem:[#allocation7 + $0x100] ss:$16 sps:$4 sm:$0xff]  }
  0xa3   :  { %1033 = vmatprep.subr.bf16.mxu1 %v3130_v44  ;;  %v3511_v44 = vld [vmem:[#allocation7 + $0xe8] ss:$16 sps:$4 sm:$0xff]  }
  0xa4   :  { %993 = vmatpush1.bf16.msra.mxu0 %v3127_v24  ;;  %v3481_v24 = vld [vmem:[#allocation7 + $0x48] ss:$16 sps:$4 sm:$0xff]  }
  0xa5   :  { %994 = vmatprep.subr.bf16.mxu0 %v3136_v29  ;;  %v3487_v29 = vld [vmem:[#allocation7 + $0x68] ss:$16 sps:$4 sm:$0xff]  }
  0xa6   :  { %1034 = vmatpush1.bf16.msra.mxu1 %v3129_v46  ;;  %v3526_v46 = vld [vmem:[#allocation7 + $0x140] ss:$16 sps:$4 sm:$0xff]  }
  0xa7   :  { %1035 = vmatprep.subr.bf16.mxu1 %v3138_v51  ;;  %v3523_v51 = vld [vmem:[#allocation7 + $0x128] ss:$16 sps:$4 sm:$0xff]  }
  0xa8   :  { %995 = vmatpush1.bf16.msra.mxu0 %v3135_v33  ;;  %v3501_v33 = vld [vmem:[#allocation7 + $0xac] ss:$16 sps:$4 sm:$0xff]  }
  0xa9   :  { %996 = vmatprep.subr.bf16.mxu0 %v3144_v37  ;;  %v3507_v37 = vld [vmem:[#allocation7 + $0xcc] ss:$16 sps:$4 sm:$0xff]  }
  0xaa   :  { %1036 = vmatpush1.bf16.msra.mxu1 %v3137_v53  ;;  %v3538_v53 = vld [vmem:[#allocation7 + $0x180] ss:$16 sps:$4 sm:$0xff]  }
  0xab   :  { %1037 = vmatprep.subr.bf16.mxu1 %v3146_v57  ;;  %v3544_v57 = vld [vmem:[#allocation7 + $0x1a0] ss:$16 sps:$4 sm:$0xff]  }
  0xac   :  { %997 = vmatpush1.bf16.msra.mxu0 %v3143_v41  ;;  %v3513_v41 = vld [vmem:[#allocation7 + $0xec] ss:$16 sps:$4 sm:$0xff]  }
  0xad   :  { %998 = vmatprep.subr.bf16.mxu0 %v3152_v45  ;;  %v3519_v45 = vld [vmem:[#allocation7 + $0x10c] ss:$16 sps:$4 sm:$0xff]  }
  0xae   :  { %1038 = vmatpush1.bf16.msra.mxu1 %v3145_v59  ;;  %v3535_v59 = vld [vmem:[#allocation7 + $0x168] ss:$16 sps:$4 sm:$0xff]  }
  0xaf   :  { %1039 = vmatprep.subr.bf16.mxu1 %v3154_v0  ;;  %v3549_v0 = vld [vmem:[#allocation7 + $0x1ac] ss:$16 sps:$4 sm:$0xff]  }
  0xb0   :  { %999 = vmatpush1.bf16.msra.mxu0 %v3151_v49  ;;  %v3525_v49 = vld [vmem:[#allocation7 + $0x12c] ss:$16 sps:$4 sm:$0xff]  }
  0xb1   :  { %1000 = vmatprep.subr.bf16.mxu0 %v3160_v52  ;;  %v3531_v52 = vld [vmem:[#allocation7 + $0x14c] ss:$16 sps:$4 sm:$0xff]  }
  0xb2   :  { %1040 = vmatpush1.bf16.msra.mxu1 %v3153_v2  ;;  %v3564_v2 = vld [vmem:[#allocation7 + $0x204] ss:$16 sps:$4 sm:$0xff]  }
  0xb3   :  { %1041 = vmatprep.subr.bf16.mxu1 %v3162_v7  ;;  %v3561_v7 = vld [vmem:[#allocation7 + $0x1ec] ss:$16 sps:$4 sm:$0xff]  }
  0xb4   :  { %1001 = vmatpush1.bf16.msra.mxu0 %v3159_v56  ;;  %v3537_v56 = vld [vmem:[#allocation7 + $0x16c] ss:$16 sps:$4 sm:$0xff]  }
  0xb5   :  { %1002 = vmatprep.subr.bf16.mxu0 %v3168_v58  ;;  %v3552_v58 = vld [vmem:[#allocation7 + $0x1c4] ss:$16 sps:$4 sm:$0xff]  }
  0xb6   :  { %1042 = vmatpush1.bf16.msra.mxu1 %v3161_v9  ;;  %v3567_v9 = vld [vmem:[#allocation7 + $0x20c] ss:$16 sps:$4 sm:$0xff]  }
  0xb7   :  { %1043 = vmatprep.subr.bf16.mxu1 %v3170_v11 }
  0xb8   :  { %1003 = vmatpush1.bf16.msra.mxu0 %v3167_v63  ;;  %v3541_v63 = vld [vmem:[#allocation7 + $0x188] ss:$16 sps:$4 sm:$0xff]  }
  0xb9   :  { %2638 = vmatprep.subr.bf16.mxu0 %v3468_v62  ;;  %v3558_v62 = vld [vmem:[#allocation7 + $0x1e4] ss:$16 sps:$4 sm:$0xff]  }
  0xba   :  { %1044 = vmatpush1.bf16.msra.mxu1 %v3169_v20 }
  0xbb   :  { %1005 = vmatmul.mubr.bf16.vlgmr.msra.gmra.mrb[4].mxu0 %v4007_v3  ;;  %2802 = vmatprep.subr.bf16.mxu1 %v3471_v12 }
  0xbc   :  { %2639 = vmatpush1.bf16.msra.mxu0 %v3466_v1  ;;  %v3556_v1 = vld [vmem:[#allocation7 + $0x1e0] ss:$16 sps:$4 sm:$0xff]  }
  0xbd   :  { %2640 = vmatprep.subr.bf16.mxu0 %v3474_v6  ;;  %1046 = vmatmul.mubr.bf16.vlgmr.msra.gmra.mrb[4].mxu1 %v4007_v3  ;;  %v3502_v3 = vld [vmem:[#allocation7 + $0xc0] ss:$16 sps:$4 sm:$0xff]   ;;  %v3553_v6 = vld [vmem:[#allocation7 + $0x1c8] ss:$16 sps:$4 sm:$0xff]  }
  0xbe   :  { %2803 = vmatpush1.bf16.msra.mxu1 %v3469_v15 }
  0xbf   :  { %2804 = vmatprep.subr.bf16.mxu1 %v3477_v16 }
  0xc0   :  { %2641 = vmatpush1.bf16.msra.mxu0 %v3472_v8  ;;  %v3559_v8 = vld [vmem:[#allocation7 + $0x1e8] ss:$16 sps:$4 sm:$0xff]  }
  0xc1   :  { %2642 = vmatprep.subr.bf16.mxu0 %v3480_v10  ;;  %v203_v10 = vlaneseq }
  0xc2   :  { %2805 = vmatpush1.bf16.msra.mxu1 %v3475_v19 }
  0xc3   :  { %2806 = vmatprep.subr.bf16.mxu1 %v3483_v21  ;;  %v4015_v11 = vshrl.u32 %v203_v10, 7  ;;  %v3618_v10 = vld [vmem:[#allocation7 + $0x324] ss:$16 sps:$4 sm:$0xff]  }
  0xc4   :  { %2643 = vmatpush1.bf16.msra.mxu0 %v3478_v13  ;;  %v4023_v13 = vld [vmem:[%s4102_s3] sm:$0xff] }
  0xc5   :  { %2644 = vmatprep.subr.bf16.mxu0 %v3486_v14  ;;  %v4018_v12 = vsub.s32 0, %v4015_v11  ;;  %v209_v20 = vsub.s32 1, %v4015_v11 }
  0xc6   :  { %2807 = vmatpush1.bf16.msra.mxu1 %v3481_v24 }
  0xc7   :  { %2808 = vmatprep.subr.bf16.mxu1 %v3489_v26  ;;  %v206_v14 = vrot.slane %v4023_v13, %v4018_v12  ;;  %v210_v15 = vrot.slane %v4023_v13, %v209_v20 }
  0xc8   :  { %2645 = vmatpush1.bf16.msra.mxu0 %v3484_v17  ;;  %v4031_v17 = vstv %s1054_s1 }
  0xc9   :  { %2646 = vmatprep.subr.bf16.mxu0 %v3492_v18 }
  0xca   :  { %2809 = vmatpush1.bf16.msra.mxu1 %v3487_v29 }
  0xcb   :  { %2810 = vmatprep.subr.bf16.mxu1 %v3495_v30 }
  0xcc   :  { %2647 = vmatpush1.bf16.msra.mxu0 %v3490_v22 }
  0xcd   :  { %2648 = vmatprep.subr.bf16.mxu0 %v3498_v23 }
  0xce   :  { %2811 = vmatpush1.bf16.msra.mxu1 %v3493_v32 }
  0xcf   :  { %2812 = vmatprep.subr.bf16.mxu1 %v3501_v33  ;;  %v3570_v33 = vld [vmem:[#allocation7 + $0x224] ss:$16 sps:$4 sm:$0xff]  }
  0xd0   :  { %2649 = vmatpush1.bf16.msra.mxu0 %v3496_v27 }
  0xd1   :  { %2650 = vmatprep.subr.bf16.mxu0 %v3504_v28  ;;  %v217_v28 = vsub.s32 3, %v4015_v11 }
  0xd2   :  { %2813 = vmatpush1.bf16.msra.mxu1 %v3499_v36 }
  0xd3   :  { %2814 = vmatprep.subr.bf16.mxu1 %v3507_v37  ;;  %v3568_v37 = vld [vmem:[#allocation7 + $0x220] ss:$16 sps:$4 sm:$0xff]  }
  0xd4   :  { %2651 = vmatpush1.bf16.msra.mxu0 %v3502_v3  ;;  %v3562_v3 = vld [vmem:[#allocation7 + $0x200] ss:$16 sps:$4 sm:$0xff]  }
  0xd5   :  { %2652 = vmatprep.subr.bf16.mxu0 %v3510_v31  ;;  %v3565_v31 = vld [vmem:[#allocation7 + $0x208] ss:$16 sps:$4 sm:$0xff]  }
  0xd6   :  { %2815 = vmatpush1.bf16.msra.mxu1 %v3505_v40  ;;  %v3576_v40 = vld [vmem:[#allocation7 + $0x244] ss:$16 sps:$4 sm:$0xff]  }
  0xd7   :  { %2816 = vmatprep.subr.bf16.mxu1 %v3513_v41  ;;  %v3579_v41 = vld [vmem:[#allocation7 + $0x24c] ss:$16 sps:$4 sm:$0xff]  }
  0xd8   :  { %2653 = vmatpush1.bf16.msra.mxu0 %v3508_v34  ;;  %v3573_v34 = vld [vmem:[#allocation7 + $0x22c] ss:$16 sps:$4 sm:$0xff]  }
  0xd9   :  { %2654 = vmatprep.subr.bf16.mxu0 %v3516_v35  ;;  %v218_v35 = vrot.slane %v4023_v13, %v217_v28 }
  0xda   :  { %2817 = vmatpush1.bf16.msra.mxu1 %v3511_v44 }
  0xdb   :  { %2818 = vmatprep.subr.bf16.mxu1 %v3519_v45 }
  0xdc   :  { %2655 = vmatpush1.bf16.msra.mxu0 %v3514_v38  ;;  %v3571_v38 = vld [vmem:[#allocation7 + $0x228] ss:$16 sps:$4 sm:$0xff]  }
  0xdd   :  { %2656 = vmatprep.subr.bf16.mxu0 %v3522_v39 }
  0xde   :  { %2819 = vmatpush1.bf16.msra.mxu1 %v3517_v48  ;;  %v3582_v48 = vld [vmem:[#allocation7 + $0x264] ss:$16 sps:$4 sm:$0xff]  }
  0xdf   :  { %2820 = vmatprep.subr.bf16.mxu1 %v3525_v49  ;;  %v3585_v49 = vld [vmem:[#allocation7 + $0x26c] ss:$16 sps:$4 sm:$0xff]  }
  0xe0   :  { %2657 = vmatpush1.bf16.msra.mxu0 %v3520_v42 }
  0xe1   :  { %2658 = vmatprep.subr.bf16.mxu0 %v3528_v43 }
  0xe2   :  { %2821 = vmatpush1.bf16.msra.mxu1 %v3523_v51  ;;  %v3580_v51 = vld [vmem:[#allocation7 + $0x260] ss:$16 sps:$4 sm:$0xff]  }
  0xe3   :  { %2822 = vmatprep.subr.bf16.mxu1 %v3531_v52  ;;  %v3583_v52 = vld [vmem:[#allocation7 + $0x268] ss:$16 sps:$4 sm:$0xff]  }
  0xe4   :  { %2659 = vmatpush1.bf16.msra.mxu0 %v3526_v46  ;;  %v3574_v46 = vld [vmem:[#allocation7 + $0x240] ss:$16 sps:$4 sm:$0xff]  }
  0xe5   :  { %2660 = vmatprep.subr.bf16.mxu0 %v3534_v47  ;;  %v3577_v47 = vld [vmem:[#allocation7 + $0x248] ss:$16 sps:$4 sm:$0xff]  }
  0xe6   :  { %2823 = vmatpush1.bf16.msra.mxu1 %v3529_v55  ;;  %v3586_v55 = vld [vmem:[#allocation7 + $0x280] ss:$16 sps:$4 sm:$0xff]  }
  0xe7   :  { %2824 = vmatprep.subr.bf16.mxu1 %v3537_v56  ;;  %v3589_v56 = vld [vmem:[#allocation7 + $0x288] ss:$16 sps:$4 sm:$0xff]  }
  0xe8   :  { %2661 = vmatpush1.bf16.msra.mxu0 %v3532_v50 }
  0xe9   :  { %2662 = vmatprep.subr.bf16.mxu0 %v3540_v25 }
  0xea   :  { %2825 = vmatpush1.bf16.msra.mxu1 %v3535_v59  ;;  %v3592_v59 = vld [vmem:[#allocation7 + $0x2a0] ss:$16 sps:$4 sm:$0xff]  }
  0xeb   :  { %2826 = vmatprep.subr.bf16.mxu1 %v3543_v60  ;;  %v3595_v60 = vld [vmem:[#allocation7 + $0x2a8] ss:$16 sps:$4 sm:$0xff]  }
  0xec   :  { %2663 = vmatpush1.bf16.msra.mxu0 %v3538_v53  ;;  %v3588_v53 = vld [vmem:[#allocation7 + $0x284] ss:$16 sps:$4 sm:$0xff]  }
  0xed   :  { %2664 = vmatprep.subr.bf16.mxu0 %v3546_v54  ;;  %v3591_v54 = vld [vmem:[#allocation7 + $0x28c] ss:$16 sps:$4 sm:$0xff]  }
  0xee   :  { %2827 = vmatpush1.bf16.msra.mxu1 %v3541_v63  ;;  %v3598_v63 = vld [vmem:[#allocation7 + $0x2c0] ss:$16 sps:$4 sm:$0xff]  }
  0xef   :  { %2828 = vmatprep.subr.bf16.mxu1 %v3549_v0  ;;  %v3601_v0 = vld [vmem:[#allocation7 + $0x2c8] ss:$16 sps:$4 sm:$0xff]  }
  0xf0   :  { %2665 = vmatpush1.bf16.msra.mxu0 %v3544_v57  ;;  %v3594_v57 = vld [vmem:[#allocation7 + $0x2a4] ss:$16 sps:$4 sm:$0xff]  }
  0xf1   :  { %2666 = vmatprep.subr.bf16.mxu0 %v3552_v58  ;;  %v3597_v58 = vld [vmem:[#allocation7 + $0x2ac] ss:$16 sps:$4 sm:$0xff]  }
  0xf2   :  { %2829 = vmatpush1.bf16.msra.mxu1 %v3547_v4  ;;  %v3604_v4 = vld [vmem:[#allocation7 + $0x2e0] ss:$16 sps:$4 sm:$0xff]  }
  0xf3   :  { %2830 = vmatprep.subr.bf16.mxu1 %v3555_v5  ;;  %v3607_v5 = vld [vmem:[#allocation7 + $0x2e8] ss:$16 sps:$4 sm:$0xff]  }
  0xf4   :  { %2667 = vmatpush1.bf16.msra.mxu0 %v3550_v61  ;;  %v3600_v61 = vld [vmem:[#allocation7 + $0x2c4] ss:$16 sps:$4 sm:$0xff]  }
  0xf5   :  { %2668 = vmatprep.subr.bf16.mxu0 %v3558_v62  ;;  %v3603_v62 = vld [vmem:[#allocation7 + $0x2cc] ss:$16 sps:$4 sm:$0xff]  }
  0xf6   :  { %2831 = vmatpush1.bf16.msra.mxu1 %v3553_v6  ;;  %v3612_v6 = vld [vmem:[#allocation7 + $0x304] ss:$16 sps:$4 sm:$0xff]  }
  0xf7   :  { %2832 = vmatprep.subr.bf16.mxu1 %v3561_v7  ;;  %v3615_v7 = vld [vmem:[#allocation7 + $0x30c] ss:$16 sps:$4 sm:$0xff]  }
  0xf8   :  { %2669 = vmatpush1.bf16.msra.mxu0 %v3556_v1  ;;  %v3606_v1 = vld [vmem:[#allocation7 + $0x2e4] ss:$16 sps:$4 sm:$0xff]  }
  0xf9   :  { %2679 = vmatprep.subr.bf16.mxu0 %v3564_v2  ;;  %v3609_v2 = vld [vmem:[#allocation7 + $0x2ec] ss:$16 sps:$4 sm:$0xff]  }
  0xfa   :  { %2833 = vmatpush1.bf16.msra.mxu1 %v3559_v8  ;;  %v3610_v8 = vld [vmem:[#allocation7 + $0x300] ss:$16 sps:$4 sm:$0xff]  }
  0xfb   :  { %2843 = vmatprep.subr.bf16.mxu1 %v3567_v9  ;;  %v3613_v9 = vld [vmem:[#allocation7 + $0x308] ss:$16 sps:$4 sm:$0xff]  }
 0x14e   :  { %v924_v16 = vpop.f32.mrb[0].mxu0 }
 0x14f   :  { %v925_v18 = vadd.f32 %v924_v16, %v206_v14  ;;  %v926_v19 = vpop.f32.mrb[1].mxu0  ;;  %v3621_v14 = vld [vmem:[#allocation7 + $0x32c] ss:$16 sps:$4 sm:$0xff]   ;;  %v3619_v16 = vld [vmem:[#allocation7 + $0x328] ss:$16 sps:$4 sm:$0xff]  }
 0x150   :  { %v927_v21 = vadd.f32 %v926_v19, %v210_v15  ;;  %v928_v22 = vpop.f32.mrb[2].mxu0  ;;  %v4039_v36 = vpop.f32.mrb[0].mxu1  ;;  %v3616_v15 = vld [vmem:[#allocation7 + $0x320] ss:$16 sps:$4 sm:$0xff]   ;;  %v3627_v19 = vld [vmem:[#allocation7 + $0x34c] ss:$16 sps:$4 sm:$0xff]  }
 0x151   :  { %v1056_v23 = vmul.f32 %v4031_v17, %v925_v18  ;;  %v929_v24 = vpop.f32.mrb[3].mxu0  ;;  %v967_v39 = vpop.f32.mrb[1].mxu1  ;;  %v3625_v22 = vld [vmem:[#allocation7 + $0x348] ss:$16 sps:$4 sm:$0xff]  }
 0x152   :  { %v1057_v26 = vmul.f32 %v4031_v17, %v927_v21  ;;  %v968_v42 = vadd.f32 %v967_v39, %v218_v35  ;;  %v969_v43 = vpop.f32.mrb[2].mxu1  ;;  %v3633_v24 = vld [vmem:[#allocation7 + $0x36c] ss:$16 sps:$4 sm:$0xff]   ;;  %v3643_v39 = vld [vmem:[#allocation7 + $0x3a8] ss:$16 sps:$4 sm:$0xff]  }
 0x153   :  { %v1064_v27 = vmax.f32 %v925_v18, %v1056_v23  ;;  %v970_v44 = vpop.f32.mrb[3].mxu1  ;;  %v3624_v18 = vld [vmem:[#allocation7 + $0x344] ss:$16 sps:$4 sm:$0xff]   ;;  %v3645_v35 = vld [vmem:[#allocation7 + $0x3ac] ss:$16 sps:$4 sm:$0xff]  }
 0x154   :  { %v1065_v29 = vmax.f32 %v927_v21, %v1057_v26  ;;  %v1059_v45 = vmul.f32 %v4031_v17, %v968_v42  ;;  %v3622_v21 = vld [vmem:[#allocation7 + $0x340] ss:$16 sps:$4 sm:$0xff]   ;;  %v3630_v23 = vld [vmem:[#allocation7 + $0x364] ss:$16 sps:$4 sm:$0xff]  }
 0x155   :  { %v1072_v32 = vpack.c.bf16 %v1064_v27, %v1064_v27  ;;  %v3628_v26 = vld [vmem:[#allocation7 + $0x360] ss:$16 sps:$4 sm:$0xff]   ;;  %v3631_v27 = vld [vmem:[#allocation7 + $0x368] ss:$16 sps:$4 sm:$0xff]  }
 0x156   :  { %v1073_v30 = vpack.c.bf16 %v1065_v29, %v1065_v29  ;;  %v1067_v50 = vmax.f32 %v968_v42, %v1059_v45  ;;  %v3636_v29 = vld [vmem:[#allocation7 + $0x384] ss:$16 sps:$4 sm:$0xff]   ;;  %v3651_v42 = vld [vmem:[#allocation7 + $0x3cc] ss:$16 sps:$4 sm:$0xff]   ;;  %v3646_v44 = vld [vmem:[#allocation7 + $0x3c0] ss:$16 sps:$4 sm:$0xff]  }
 0x157   :  { %v3649_v45 = vld [vmem:[#allocation7 + $0x3c8] ss:$16 sps:$4 sm:$0xff]  }
 0x158   :  { %2670 = vmatprep.mubr.bf16.mxu0 %v1073_v30  ;;  %2834 = vmatprep.mubr.bf16.mxu1 %v1073_v30  ;;  %v1075_v25 = vpack.c.bf16 %v1067_v50, %v1067_v50  ;;  %v3639_v30 = vld [vmem:[#allocation7 + $0x38c] ss:$16 sps:$4 sm:$0xff]  }
 0x159   :  { %2671 = vmatmul.mubr.bf16.vlgmr.msra.gmra.mrb[8].mxu0 %v1072_v32  ;;  %2835 = vmatmul.mubr.bf16.vlgmr.msra.gmra.mrb[8].mxu1 %v1072_v32  ;;  %v3637_v32 = vld [vmem:[#allocation7 + $0x388] ss:$16 sps:$4 sm:$0xff]  }
 0x15a   :  { %2680 = vmatpush1.bf16.msra.mxu0 %v3562_v3  ;;  %2844 = vmatpush1.bf16.msra.mxu1 %v3565_v31  ;;  %v4043_v3 = vsub.s32 2, %v4015_v11  ;;  %v3634_v31 = vld [vmem:[#allocation7 + $0x380] ss:$16 sps:$4 sm:$0xff]  }
 0x15b   :  { %2681 = vmatprep.subr.bf16.mxu0 %v3570_v33  ;;  %2845 = vmatprep.subr.bf16.mxu1 %v3573_v34  ;;  %v3642_v34 = vld [vmem:[#allocation7 + $0x3a4] ss:$16 sps:$4 sm:$0xff]  }
 0x15c   :  { %2711 = vmatprep.mubr.bf16.mxu0 %v1075_v25  ;;  %2875 = vmatprep.mubr.bf16.mxu1 %v1075_v25  ;;  %v214_v33 = vrot.slane %v4023_v13, %v4043_v3 }
 0x15e   :  { %2682 = vmatpush1.bf16.msra.mxu0 %v3568_v37  ;;  %2846 = vmatpush1.bf16.msra.mxu1 %v3571_v38  ;;  %v225_v37 = vsub.s32 5, %v4015_v11  ;;  %v3640_v38 = vld [vmem:[#allocation7 + $0x3a0] ss:$16 sps:$4 sm:$0xff]  }
 0x15f   :  { %2683 = vmatprep.subr.bf16.mxu0 %v3576_v40  ;;  %2847 = vmatprep.subr.bf16.mxu1 %v3579_v41  ;;  %v966_v40 = vadd.f32 %v4039_v36, %v214_v33  ;;  %v3648_v41 = vld [vmem:[#allocation7 + $0x3c4] ss:$16 sps:$4 sm:$0xff]   ;;  %v3694_v33 = vld [vmem:[#allocation7 + $0x4c0] ss:$16 sps:$4 sm:$0xff]  }
 0x160   :  { %v226_v43 = vrot.slane %v4023_v13, %v225_v37  ;;  %v3705_v37 = vld [vmem:[#allocation7 + $0x4ec] ss:$16 sps:$4 sm:$0xff]  }
 0x162   :  { %2684 = vmatpush1.bf16.msra.mxu0 %v3574_v46  ;;  %2848 = vmatpush1.bf16.msra.mxu1 %v3577_v47  ;;  %v1058_v47 = vmul.f32 %v4031_v17, %v966_v40 }
 0x163   :  { %2685 = vmatprep.subr.bf16.mxu0 %v3582_v48  ;;  %2849 = vmatprep.subr.bf16.mxu1 %v3585_v49  ;;  %v3654_v48 = vld [vmem:[#allocation7 + $0x3e4] ss:$16 sps:$4 sm:$0xff]   ;;  %v3657_v49 = vld [vmem:[#allocation7 + $0x3ec] ss:$16 sps:$4 sm:$0xff]  }
 0x166   :  { %2686 = vmatpush1.bf16.msra.mxu0 %v3580_v51  ;;  %2850 = vmatpush1.bf16.msra.mxu1 %v3583_v52  ;;  %v3652_v52 = vld [vmem:[#allocation7 + $0x3e0] ss:$16 sps:$4 sm:$0xff]  }
 0x167   :  { %2687 = vmatprep.subr.bf16.mxu0 %v3588_v53  ;;  %2851 = vmatprep.subr.bf16.mxu1 %v3591_v54  ;;  %v3655_v53 = vld [vmem:[#allocation7 + $0x3e8] ss:$16 sps:$4 sm:$0xff]  }
 0x16a   :  { %2688 = vmatpush1.bf16.msra.mxu0 %v3586_v55  ;;  %2852 = vmatpush1.bf16.msra.mxu1 %v3589_v56  ;;  %v1066_v55 = vmax.f32 %v966_v40, %v1058_v47  ;;  %v3660_v56 = vld [vmem:[#allocation7 + $0x404] ss:$16 sps:$4 sm:$0xff]   ;;  %v3712_v47 = vld [vmem:[#allocation7 + $0x520] ss:$16 sps:$4 sm:$0xff]  }
 0x16b   :  { %2689 = vmatprep.subr.bf16.mxu0 %v3594_v57  ;;  %2853 = vmatprep.subr.bf16.mxu1 %v3597_v58  ;;  %v3663_v57 = vld [vmem:[#allocation7 + $0x40c] ss:$16 sps:$4 sm:$0xff]   ;;  %v3708_v40 = vld [vmem:[#allocation7 + $0x504] ss:$16 sps:$4 sm:$0xff]  }
 0x16e   :  { %2690 = vmatpush1.bf16.msra.mxu0 %v3592_v59  ;;  %2854 = vmatpush1.bf16.msra.mxu1 %v3595_v60  ;;  %v3658_v59 = vld [vmem:[#allocation7 + $0x400] ss:$16 sps:$4 sm:$0xff]   ;;  %v3661_v60 = vld [vmem:[#allocation7 + $0x408] ss:$16 sps:$4 sm:$0xff]  }
 0x16f   :  { %2691 = vmatprep.subr.bf16.mxu0 %v3600_v61  ;;  %2855 = vmatprep.subr.bf16.mxu1 %v3603_v62  ;;  %v1074_v61 = vpack.c.bf16 %v1066_v55, %v1066_v55  ;;  %v3666_v62 = vld [vmem:[#allocation7 + $0x424] ss:$16 sps:$4 sm:$0xff]  }
 0x170   :  { %v3732_v55 = vld [vmem:[#allocation7 + $0x584] ss:$16 sps:$4 sm:$0xff]  }
 0x172   :  { %2692 = vmatpush1.bf16.msra.mxu0 %v3598_v63  ;;  %2856 = vmatpush1.bf16.msra.mxu1 %v3601_v0  ;;  %v3669_v63 = vld [vmem:[#allocation7 + $0x42c] ss:$16 sps:$4 sm:$0xff]  }
 0x173   :  { %2693 = vmatprep.subr.bf16.mxu0 %v3606_v1  ;;  %2857 = vmatprep.subr.bf16.mxu1 %v3609_v2  ;;  %v3664_v2 = vld [vmem:[#allocation7 + $0x420] ss:$16 sps:$4 sm:$0xff]  }
 0x176   :  { %2694 = vmatpush1.bf16.msra.mxu0 %v3604_v4  ;;  %2858 = vmatpush1.bf16.msra.mxu1 %v3607_v5  ;;  %v3667_v4 = vld [vmem:[#allocation7 + $0x428] ss:$16 sps:$4 sm:$0xff]  }
 0x177   :  { %2695 = vmatprep.subr.bf16.mxu0 %v3612_v6  ;;  %2859 = vmatprep.subr.bf16.mxu1 %v3615_v7  ;;  %v3672_v6 = vld [vmem:[#allocation7 + $0x444] ss:$16 sps:$4 sm:$0xff]   ;;  %v3675_v7 = vld [vmem:[#allocation7 + $0x44c] ss:$16 sps:$4 sm:$0xff]  }
 0x17a   :  { %2696 = vmatpush1.bf16.msra.mxu0 %v3610_v8  ;;  %2860 = vmatpush1.bf16.msra.mxu1 %v3613_v9 }
 0x17b   :  { %2697 = vmatprep.subr.bf16.mxu0 %v3618_v10  ;;  %2861 = vmatprep.subr.bf16.mxu1 %v3621_v14  ;;  %v3670_v10 = vld [vmem:[#allocation7 + $0x440] ss:$16 sps:$4 sm:$0xff]   ;;  %v3673_v14 = vld [vmem:[#allocation7 + $0x448] ss:$16 sps:$4 sm:$0xff]  }
 0x17e   :  { %2698 = vmatpush1.bf16.msra.mxu0 %v3616_v15  ;;  %2862 = vmatpush1.bf16.msra.mxu1 %v3619_v16  ;;  %v3678_v15 = vld [vmem:[#allocation7 + $0x464] ss:$16 sps:$4 sm:$0xff]   ;;  %v3681_v16 = vld [vmem:[#allocation7 + $0x46c] ss:$16 sps:$4 sm:$0xff]  }
 0x17f   :  { %2699 = vmatprep.subr.bf16.mxu0 %v3624_v18  ;;  %2863 = vmatprep.subr.bf16.mxu1 %v3627_v19  ;;  %v3676_v18 = vld [vmem:[#allocation7 + $0x460] ss:$16 sps:$4 sm:$0xff]   ;;  %v3679_v19 = vld [vmem:[#allocation7 + $0x468] ss:$16 sps:$4 sm:$0xff]  }
 0x182   :  { %2700 = vmatpush1.bf16.msra.mxu0 %v3622_v21  ;;  %2864 = vmatpush1.bf16.msra.mxu1 %v3625_v22  ;;  %v3684_v21 = vld [vmem:[#allocation7 + $0x484] ss:$16 sps:$4 sm:$0xff]   ;;  %v3687_v22 = vld [vmem:[#allocation7 + $0x48c] ss:$16 sps:$4 sm:$0xff]  }
 0x183   :  { %2701 = vmatprep.subr.bf16.mxu0 %v3630_v23  ;;  %2865 = vmatprep.subr.bf16.mxu1 %v3633_v24  ;;  %v3682_v23 = vld [vmem:[#allocation7 + $0x480] ss:$16 sps:$4 sm:$0xff]   ;;  %v3685_v24 = vld [vmem:[#allocation7 + $0x488] ss:$16 sps:$4 sm:$0xff]  }
 0x186   :  { %2702 = vmatpush1.bf16.msra.mxu0 %v3628_v26  ;;  %2866 = vmatpush1.bf16.msra.mxu1 %v3631_v27  ;;  %v3690_v26 = vld [vmem:[#allocation7 + $0x4a4] ss:$16 sps:$4 sm:$0xff]   ;;  %v3693_v27 = vld [vmem:[#allocation7 + $0x4ac] ss:$16 sps:$4 sm:$0xff]  }
 0x187   :  { %2703 = vmatprep.subr.bf16.mxu0 %v3636_v29  ;;  %2867 = vmatprep.subr.bf16.mxu1 %v3639_v30  ;;  %v3688_v29 = vld [vmem:[#allocation7 + $0x4a0] ss:$16 sps:$4 sm:$0xff]   ;;  %v3691_v30 = vld [vmem:[#allocation7 + $0x4a8] ss:$16 sps:$4 sm:$0xff]  }
 0x18a   :  { %2704 = vmatpush1.bf16.msra.mxu0 %v3634_v31  ;;  %2868 = vmatpush1.bf16.msra.mxu1 %v3637_v32  ;;  %v3696_v31 = vld [vmem:[#allocation7 + $0x4c4] ss:$16 sps:$4 sm:$0xff]   ;;  %v3699_v32 = vld [vmem:[#allocation7 + $0x4cc] ss:$16 sps:$4 sm:$0xff]  }
 0x18b   :  { %2705 = vmatprep.subr.bf16.mxu0 %v3642_v34  ;;  %2869 = vmatprep.subr.bf16.mxu1 %v3645_v35  ;;  %v3697_v34 = vld [vmem:[#allocation7 + $0x4c8] ss:$16 sps:$4 sm:$0xff]   ;;  %v3702_v35 = vld [vmem:[#allocation7 + $0x4e4] ss:$16 sps:$4 sm:$0xff]  }
 0x18e   :  { %2706 = vmatpush1.bf16.msra.mxu0 %v3640_v38  ;;  %2870 = vmatpush1.bf16.msra.mxu1 %v3643_v39  ;;  %v4050_v46 = vpop.f32.mrb[4].mxu0  ;;  %v3700_v38 = vld [vmem:[#allocation7 + $0x4e0] ss:$16 sps:$4 sm:$0xff]   ;;  %v3703_v39 = vld [vmem:[#allocation7 + $0x4e8] ss:$16 sps:$4 sm:$0xff]  }
 0x18f   :  { %2707 = vmatprep.subr.bf16.mxu0 %v3648_v41  ;;  %2871 = vmatprep.subr.bf16.mxu1 %v3651_v42  ;;  %v1008_v50 = vpop.f32.mrb[5].mxu0  ;;  %v3711_v41 = vld [vmem:[#allocation7 + $0x50c] ss:$16 sps:$4 sm:$0xff]   ;;  %v3706_v42 = vld [vmem:[#allocation7 + $0x500] ss:$16 sps:$4 sm:$0xff]  }
 0x190   :  { %v1009_v36 = vadd.f32 %v1008_v50, %v226_v43  ;;  %v1010_v25 = vpop.f32.mrb[6].mxu0  ;;  %v4054_v1 = vpop.f32.mrb[4].mxu1  ;;  %v3709_v43 = vld [vmem:[#allocation7 + $0x508] ss:$16 sps:$4 sm:$0xff]   ;;  %v3723_v50 = vld [vmem:[#allocation7 + $0x54c] ss:$16 sps:$4 sm:$0xff]  }
 0x191   :  { %v1011_v51 = vpop.f32.mrb[7].mxu0  ;;  %v4056_v5 = vpop.f32.mrb[5].mxu1  ;;  %v3721_v25 = vld [vmem:[#allocation7 + $0x548] ss:$16 sps:$4 sm:$0xff]  }
 0x192   :  { %2708 = vmatpush1.bf16.msra.mxu0 %v3646_v44  ;;  %2872 = vmatpush1.bf16.msra.mxu1 %v3649_v45  ;;  %v1061_v54 = vmul.f32 %v4031_v17, %v1009_v36  ;;  %v1051_v8 = vpop.f32.mrb[6].mxu1  ;;  %v3714_v44 = vld [vmem:[#allocation7 + $0x524] ss:$16 sps:$4 sm:$0xff]   ;;  %v3717_v45 = vld [vmem:[#allocation7 + $0x52c] ss:$16 sps:$4 sm:$0xff]  }
 0x193   :  { %2709 = vmatprep.subr.bf16.mxu0 %v3654_v48  ;;  %2873 = vmatprep.subr.bf16.mxu1 %v3657_v49  ;;  %v1052_v9 = vpop.f32.mrb[7].mxu1  ;;  %v3715_v48 = vld [vmem:[#allocation7 + $0x528] ss:$16 sps:$4 sm:$0xff]   ;;  %v3720_v49 = vld [vmem:[#allocation7 + $0x544] ss:$16 sps:$4 sm:$0xff]  }
 0x194   :  { %v1069_v58 = vmax.f32 %v1009_v36, %v1061_v54  ;;  %v3718_v36 = vld [vmem:[#allocation7 + $0x540] ss:$16 sps:$4 sm:$0xff]   ;;  %v3726_v51 = vld [vmem:[#allocation7 + $0x564] ss:$16 sps:$4 sm:$0xff]   ;;  %v3727_v54 = vld [vmem:[#allocation7 + $0x568] ss:$16 sps:$4 sm:$0xff]  }
 0x195   :  { %v3747_v8 = vld [vmem:[#allocation7 + $0x5cc] ss:$16 sps:$4 sm:$0xff]  }
 0x196   :  { %2710 = vmatpush1.bf16.msra.mxu0 %v3652_v52  ;;  %2874 = vmatpush1.bf16.msra.mxu1 %v3655_v53  ;;  %v1077_v0 = vpack.c.bf16 %v1069_v58, %v1069_v58  ;;  %v3729_v52 = vld [vmem:[#allocation7 + $0x56c] ss:$16 sps:$4 sm:$0xff]   ;;  %v3724_v53 = vld [vmem:[#allocation7 + $0x560] ss:$16 sps:$4 sm:$0xff]   ;;  %v233_v58 = vsub.s32 7, %v4015_v11 }
 0x197   :  { %2720 = vmatprep.subr.bf16.mxu0 %v3660_v56  ;;  %2884 = vmatprep.subr.bf16.mxu1 %v3663_v57  ;;  %v3735_v56 = vld [vmem:[#allocation7 + $0x58c] ss:$16 sps:$4 sm:$0xff]   ;;  %v221_v57 = vsub.s32 4, %v4015_v11 }
 0x199   :  { %2712 = vmatmul.mubr.bf16.vlgmr.msra.gmra.mrb[8].mxu0 %v1074_v61  ;;  %2876 = vmatmul.mubr.bf16.vlgmr.msra.gmra.mrb[8].mxu1 %v1074_v61  ;;  %v222_v61 = vrot.slane %v4023_v13, %v221_v57 }
 0x19a   :  { %2721 = vmatpush1.bf16.msra.mxu0 %v3658_v59  ;;  %2885 = vmatpush1.bf16.msra.mxu1 %v3661_v60  ;;  %v3730_v59 = vld [vmem:[#allocation7 + $0x580] ss:$16 sps:$4 sm:$0xff]   ;;  %v3733_v60 = vld [vmem:[#allocation7 + $0x588] ss:$16 sps:$4 sm:$0xff]  }
 0x19b   :  { %2722 = vmatprep.subr.bf16.mxu0 %v3666_v62  ;;  %2886 = vmatprep.subr.bf16.mxu1 %v3669_v63  ;;  %v3738_v62 = vld [vmem:[#allocation7 + $0x5a4] ss:$16 sps:$4 sm:$0xff]   ;;  %v3741_v63 = vld [vmem:[#allocation7 + $0x5ac] ss:$16 sps:$4 sm:$0xff]  }
 0x19c   :  { %2752 = vmatprep.mubr.bf16.mxu0 %v1077_v0  ;;  %2916 = vmatprep.mubr.bf16.mxu1 %v1077_v0  ;;  %v234_v0 = vrot.slane %v4023_v13, %v233_v58  ;;  %v3796_v58 = vld [vmem:[#allocation7 + $0x6e0] ss:$16 sps:$4 sm:$0xff]  }
 0x19e   :  { %2723 = vmatpush1.bf16.msra.mxu0 %v3664_v2  ;;  %2887 = vmatpush1.bf16.msra.mxu1 %v3667_v4  ;;  %v3736_v2 = vld [vmem:[#allocation7 + $0x5a0] ss:$16 sps:$4 sm:$0xff]   ;;  %v3739_v4 = vld [vmem:[#allocation7 + $0x5a8] ss:$16 sps:$4 sm:$0xff]   ;;  %v1050_v9 = vadd.f32 %v4056_v5, %v234_v0  ;;  %v3756_v5 = vld [vmem:[#allocation7 + $0x604] ss:$16 sps:$4 sm:$0xff]  }
 0x19f   :  { %2724 = vmatprep.subr.bf16.mxu0 %v3672_v6  ;;  %2888 = vmatprep.subr.bf16.mxu1 %v3675_v7  ;;  %v1007_v6 = vadd.f32 %v4050_v46, %v222_v61  ;;  %v3744_v7 = vld [vmem:[#allocation7 + $0x5c4] ss:$16 sps:$4 sm:$0xff]   ;;  %v3748_v46 = vld [vmem:[#allocation7 + $0x5e0] ss:$16 sps:$4 sm:$0xff]   ;;  %v3807_v61 = vld [vmem:[#allocation7 + $0x70c] ss:$16 sps:$4 sm:$0xff]  }
 0x1a0   :  { %v3810_v0 = vld [vmem:[#allocation7 + $0x724] ss:$16 sps:$4 sm:$0xff]  }
 0x1a2   :  { %2725 = vmatpush1.bf16.msra.mxu0 %v3670_v10  ;;  %2889 = vmatpush1.bf16.msra.mxu1 %v3673_v14  ;;  %v3742_v10 = vld [vmem:[#allocation7 + $0x5c0] ss:$16 sps:$4 sm:$0xff]   ;;  %v3745_v14 = vld [vmem:[#allocation7 + $0x5c8] ss:$16 sps:$4 sm:$0xff]  }
 0x1a3   :  { %2726 = vmatprep.subr.bf16.mxu0 %v3678_v15  ;;  %2890 = vmatprep.subr.bf16.mxu1 %v3681_v16  ;;  %v1060_v15 = vmul.f32 %v4031_v17, %v1007_v6  ;;  %v3750_v16 = vld [vmem:[#allocation7 + $0x5e4] ss:$16 sps:$4 sm:$0xff]  }
 0x1a6   :  { %2727 = vmatpush1.bf16.msra.mxu0 %v3676_v18  ;;  %2891 = vmatpush1.bf16.msra.mxu1 %v3679_v19  ;;  %v3753_v18 = vld [vmem:[#allocation7 + $0x5ec] ss:$16 sps:$4 sm:$0xff]   ;;  %v1063_v19 = vmul.f32 %v4031_v17, %v1050_v9 }
 0x1a7   :  { %2728 = vmatprep.subr.bf16.mxu0 %v3684_v21  ;;  %2892 = vmatprep.subr.bf16.mxu1 %v3687_v22  ;;  %v3751_v21 = vld [vmem:[#allocation7 + $0x5e8] ss:$16 sps:$4 sm:$0xff]   ;;  %v1068_v22 = vmax.f32 %v1007_v6, %v1060_v15  ;;  %v3825_v15 = vld [vmem:[#allocation7 + $0x76c] ss:$16 sps:$4 sm:$0xff]  }
 0x1a8   :  { %v3811_v6 = vld [vmem:[#allocation7 + $0x728] ss:$16 sps:$4 sm:$0xff]  }
 0x1aa   :  { %2729 = vmatpush1.bf16.msra.mxu0 %v3682_v23  ;;  %2893 = vmatpush1.bf16.msra.mxu1 %v3685_v24  ;;  %v3759_v23 = vld [vmem:[#allocation7 + $0x60c] ss:$16 sps:$4 sm:$0xff]   ;;  %v1071_v24 = vmax.f32 %v1050_v9, %v1063_v19  ;;  %v3814_v9 = vld [vmem:[#allocation7 + $0x740] ss:$16 sps:$4 sm:$0xff]   ;;  %v229_v19 = vsub.s32 6, %v4015_v11 }
 0x1ab   :  { %2730 = vmatprep.subr.bf16.mxu0 %v3690_v26  ;;  %2894 = vmatprep.subr.bf16.mxu1 %v3693_v27  ;;  %v3754_v26 = vld [vmem:[#allocation7 + $0x600] ss:$16 sps:$4 sm:$0xff]   ;;  %v3757_v27 = vld [vmem:[#allocation7 + $0x608] ss:$16 sps:$4 sm:$0xff]  }
 0x1ae   :  { %2731 = vmatpush1.bf16.msra.mxu0 %v3688_v29  ;;  %2895 = vmatpush1.bf16.msra.mxu1 %v3691_v30  ;;  %v1076_v29 = vpack.c.bf16 %v1068_v22, %v1068_v22  ;;  %v3762_v30 = vld [vmem:[#allocation7 + $0x624] ss:$16 sps:$4 sm:$0xff]   ;;  %v3826_v22 = vld [vmem:[#allocation7 + $0x780] ss:$16 sps:$4 sm:$0xff]  }
 0x1af   :  { %2732 = vmatprep.subr.bf16.mxu0 %v3696_v31  ;;  %2896 = vmatprep.subr.bf16.mxu1 %v3699_v32  ;;  %v3765_v31 = vld [vmem:[#allocation7 + $0x62c] ss:$16 sps:$4 sm:$0xff]   ;;  %v1079_v32 = vpack.c.bf16 %v1071_v24, %v1071_v24  ;;  %v3834_v24 = vld [vmem:[#allocation7 + $0x7a4] ss:$16 sps:$4 sm:$0xff]  }
 0x1b2   :  { %2733 = vmatpush1.bf16.msra.mxu0 %v3694_v33  ;;  %2897 = vmatpush1.bf16.msra.mxu1 %v3697_v34  ;;  %v3760_v33 = vld [vmem:[#allocation7 + $0x620] ss:$16 sps:$4 sm:$0xff]   ;;  %v3763_v34 = vld [vmem:[#allocation7 + $0x628] ss:$16 sps:$4 sm:$0xff]  }
 0x1b3   :  { %2734 = vmatprep.subr.bf16.mxu0 %v3702_v35  ;;  %2898 = vmatprep.subr.bf16.mxu1 %v3705_v37  ;;  %v3768_v35 = vld [vmem:[#allocation7 + $0x644] ss:$16 sps:$4 sm:$0xff]   ;;  %v3771_v37 = vld [vmem:[#allocation7 + $0x64c] ss:$16 sps:$4 sm:$0xff]  }
 0x1b6   :  { %2735 = vmatpush1.bf16.msra.mxu0 %v3700_v38  ;;  %2899 = vmatpush1.bf16.msra.mxu1 %v3703_v39  ;;  %v3766_v38 = vld [vmem:[#allocation7 + $0x640] ss:$16 sps:$4 sm:$0xff]   ;;  %v3769_v39 = vld [vmem:[#allocation7 + $0x648] ss:$16 sps:$4 sm:$0xff]  }
 0x1b7   :  { %2736 = vmatprep.subr.bf16.mxu0 %v3708_v40  ;;  %2900 = vmatprep.subr.bf16.mxu1 %v3711_v41  ;;  %v3774_v40 = vld [vmem:[#allocation7 + $0x664] ss:$16 sps:$4 sm:$0xff]   ;;  %v3777_v41 = vld [vmem:[#allocation7 + $0x66c] ss:$16 sps:$4 sm:$0xff]  }
 0x1ba   :  { %2737 = vmatpush1.bf16.msra.mxu0 %v3706_v42  ;;  %2901 = vmatpush1.bf16.msra.mxu1 %v3709_v43  ;;  %v3772_v42 = vld [vmem:[#allocation7 + $0x660] ss:$16 sps:$4 sm:$0xff]   ;;  %v3775_v43 = vld [vmem:[#allocation7 + $0x668] ss:$16 sps:$4 sm:$0xff]  }
 0x1bb   :  { %2738 = vmatprep.subr.bf16.mxu0 %v3714_v44  ;;  %2902 = vmatprep.subr.bf16.mxu1 %v3717_v45  ;;  %v3780_v44 = vld [vmem:[#allocation7 + $0x684] ss:$16 sps:$4 sm:$0xff]   ;;  %v3783_v45 = vld [vmem:[#allocation7 + $0x68c] ss:$16 sps:$4 sm:$0xff]  }
 0x1be   :  { %2739 = vmatpush1.bf16.msra.mxu0 %v3712_v47  ;;  %2903 = vmatpush1.bf16.msra.mxu1 %v3715_v48  ;;  %v3778_v47 = vld [vmem:[#allocation7 + $0x680] ss:$16 sps:$4 sm:$0xff]   ;;  %v3781_v48 = vld [vmem:[#allocation7 + $0x688] ss:$16 sps:$4 sm:$0xff]  }
 0x1bf   :  { %2740 = vmatprep.subr.bf16.mxu0 %v3720_v49  ;;  %2904 = vmatprep.subr.bf16.mxu1 %v3723_v50  ;;  %v3786_v49 = vld [vmem:[#allocation7 + $0x6a4] ss:$16 sps:$4 sm:$0xff]   ;;  %v3789_v50 = vld [vmem:[#allocation7 + $0x6ac] ss:$16 sps:$4 sm:$0xff]  }
 0x1c2   :  { %2741 = vmatpush1.bf16.msra.mxu0 %v3718_v36  ;;  %2905 = vmatpush1.bf16.msra.mxu1 %v3721_v25  ;;  %v3784_v36 = vld [vmem:[#allocation7 + $0x6a0] ss:$16 sps:$4 sm:$0xff]   ;;  %v3787_v25 = vld [vmem:[#allocation7 + $0x6a8] ss:$16 sps:$4 sm:$0xff]  }
 0x1c3   :  { %2742 = vmatprep.subr.bf16.mxu0 %v3726_v51  ;;  %2906 = vmatprep.subr.bf16.mxu1 %v3729_v52  ;;  %v3792_v51 = vld [vmem:[#allocation7 + $0x6c4] ss:$16 sps:$4 sm:$0xff]   ;;  %v3795_v52 = vld [vmem:[#allocation7 + $0x6cc] ss:$16 sps:$4 sm:$0xff]  }
 0x1c6   :  { %2743 = vmatpush1.bf16.msra.mxu0 %v3724_v53  ;;  %2907 = vmatpush1.bf16.msra.mxu1 %v3727_v54  ;;  %v3790_v53 = vld [vmem:[#allocation7 + $0x6c0] ss:$16 sps:$4 sm:$0xff]   ;;  %v3793_v54 = vld [vmem:[#allocation7 + $0x6c8] ss:$16 sps:$4 sm:$0xff]  }
 0x1c7   :  { %2744 = vmatprep.subr.bf16.mxu0 %v3732_v55  ;;  %2908 = vmatprep.subr.bf16.mxu1 %v3735_v56  ;;  %v3798_v55 = vld [vmem:[#allocation7 + $0x6e4] ss:$16 sps:$4 sm:$0xff]   ;;  %v3801_v56 = vld [vmem:[#allocation7 + $0x6ec] ss:$16 sps:$4 sm:$0xff]  }
 0x1ca   :  { %2745 = vmatpush1.bf16.msra.mxu0 %v3730_v59  ;;  %2909 = vmatpush1.bf16.msra.mxu1 %v3733_v60  ;;  %v3799_v59 = vld [vmem:[#allocation7 + $0x6e8] ss:$16 sps:$4 sm:$0xff]   ;;  %v3804_v60 = vld [vmem:[#allocation7 + $0x704] ss:$16 sps:$4 sm:$0xff]  }
 0x1cb   :  { %2746 = vmatprep.subr.bf16.mxu0 %v3738_v62  ;;  %2910 = vmatprep.subr.bf16.mxu1 %v3741_v63  ;;  %v3802_v62 = vld [vmem:[#allocation7 + $0x700] ss:$16 sps:$4 sm:$0xff]   ;;  %v3805_v63 = vld [vmem:[#allocation7 + $0x708] ss:$16 sps:$4 sm:$0xff]  }
 0x1ce   :  { %2747 = vmatpush1.bf16.msra.mxu0 %v3736_v2  ;;  %2911 = vmatpush1.bf16.msra.mxu1 %v3739_v4  ;;  %v3813_v2 = vld [vmem:[#allocation7 + $0x72c] ss:$16 sps:$4 sm:$0xff]   ;;  %v3808_v4 = vld [vmem:[#allocation7 + $0x720] ss:$16 sps:$4 sm:$0xff]  }
 0x1cf   :  { %2748 = vmatprep.subr.bf16.mxu0 %v3744_v7  ;;  %2912 = vmatprep.subr.bf16.mxu1 %v3747_v8  ;;  %v3816_v7 = vld [vmem:[#allocation7 + $0x744] ss:$16 sps:$4 sm:$0xff]   ;;  %v3819_v8 = vld [vmem:[#allocation7 + $0x74c] ss:$16 sps:$4 sm:$0xff]  }
 0x1d2   :  { %2749 = vmatpush1.bf16.msra.mxu0 %v3742_v10  ;;  %2913 = vmatpush1.bf16.msra.mxu1 %v3745_v14  ;;  %v3817_v10 = vld [vmem:[#allocation7 + $0x748] ss:$16 sps:$4 sm:$0xff]   ;;  %v3822_v14 = vld [vmem:[#allocation7 + $0x764] ss:$16 sps:$4 sm:$0xff]  }
 0x1d3   :  { %2750 = vmatprep.subr.bf16.mxu0 %v3750_v16  ;;  %2914 = vmatprep.subr.bf16.mxu1 %v3753_v18  ;;  %v3820_v16 = vld [vmem:[#allocation7 + $0x760] ss:$16 sps:$4 sm:$0xff]   ;;  %v3823_v18 = vld [vmem:[#allocation7 + $0x768] ss:$16 sps:$4 sm:$0xff]  }
 0x1d6   :  { %2751 = vmatpush1.bf16.msra.mxu0 %v3748_v46  ;;  %2915 = vmatpush1.bf16.msra.mxu1 %v3751_v21  ;;  %v3828_v46 = vld [vmem:[#allocation7 + $0x784] ss:$16 sps:$4 sm:$0xff]   ;;  %v3831_v21 = vld [vmem:[#allocation7 + $0x78c] ss:$16 sps:$4 sm:$0xff]  }
 0x1d7   :  { %2761 = vmatprep.subr.bf16.mxu0 %v3756_v5  ;;  %2925 = vmatprep.subr.bf16.mxu1 %v3759_v23  ;;  %v3829_v5 = vld [vmem:[#allocation7 + $0x788] ss:$16 sps:$4 sm:$0xff]   ;;  %v230_v23 = vrot.slane %v4023_v13, %v229_v19 }
 0x1d9   :  { %2753 = vmatmul.mubr.bf16.vlgmr.msra.gmra.mrb[8].mxu0 %v1076_v29  ;;  %2917 = vmatmul.mubr.bf16.vlgmr.msra.gmra.mrb[8].mxu1 %v1076_v29  ;;  %v3835_v29 = vld [vmem:[#allocation7 + $0x7a8] ss:$16 sps:$4 sm:$0xff]  }
 0x1da   :  { %2762 = vmatpush1.bf16.msra.mxu0 %v3754_v26  ;;  %2926 = vmatpush1.bf16.msra.mxu1 %v3757_v27  ;;  %v3837_v26 = vld [vmem:[#allocation7 + $0x7ac] ss:$16 sps:$4 sm:$0xff]   ;;  %v3832_v27 = vld [vmem:[#allocation7 + $0x7a0] ss:$16 sps:$4 sm:$0xff]  }
 0x1db   :  { %2763 = vmatprep.subr.bf16.mxu0 %v3762_v30  ;;  %2927 = vmatprep.subr.bf16.mxu1 %v3765_v31  ;;  %v1048_v30 = vadd.f32 %v4054_v1, %v230_v23  ;;  %v3840_v31 = vld [vmem:[#allocation7 + $0x7c4] ss:$16 sps:$4 sm:$0xff]  }
 0x1dc   :  { %2793 = vmatprep.mubr.bf16.mxu0 %v1079_v32  ;;  %2957 = vmatprep.mubr.bf16.mxu1 %v1079_v32  ;;  %v3843_v32 = vld [vmem:[#allocation7 + $0x7cc] ss:$16 sps:$4 sm:$0xff]  }
 0x1dd   :  { %v1062_v13 = vmul.f32 %v4031_v17, %v1048_v30  ;;  %v2976_v17 = vld [vmem:[%s4105_s6] sm:$0xf] }
 0x1de   :  { %2764 = vmatpush1.bf16.msra.mxu0 %v3760_v33  ;;  %2928 = vmatpush1.bf16.msra.mxu1 %v3763_v34  ;;  %v3838_v33 = vld [vmem:[#allocation7 + $0x7c0] ss:$16 sps:$4 sm:$0xff]   ;;  %v3841_v34 = vld [vmem:[#allocation7 + $0x7c8] ss:$16 sps:$4 sm:$0xff]  }
 0x1df   :  { %2765 = vmatprep.subr.bf16.mxu0 %v3768_v35  ;;  %2929 = vmatprep.subr.bf16.mxu1 %v3771_v37  ;;  %v3846_v35 = vld [vmem:[#allocation7 + $0x7e4] ss:$16 sps:$4 sm:$0xff]   ;;  %v3849_v37 = vld [vmem:[#allocation7 + $0x7ec] ss:$16 sps:$4 sm:$0xff]  }
 0x1e2   :  { %2766 = vmatpush1.bf16.msra.mxu0 %v3766_v38  ;;  %2930 = vmatpush1.bf16.msra.mxu1 %v3769_v39  ;;  %v3844_v38 = vld [vmem:[#allocation7 + $0x7e0] ss:$16 sps:$4 sm:$0xff]   ;;  %v3847_v39 = vld [vmem:[#allocation7 + $0x7e8] ss:$16 sps:$4 sm:$0xff]  }
 0x1e3   :  { %2767 = vmatprep.subr.bf16.mxu0 %v3774_v40  ;;  %2931 = vmatprep.subr.bf16.mxu1 %v3777_v41  ;;  %v1070_v40 = vmax.f32 %v1048_v30, %v1062_v13  ;;  %v1336_v41 = vld [vmem:[%s4104_s5] sm:$0xf] }
 0x1e5   :  { %v1078_v1 = vpack.c.bf16 %v1070_v40, %v1070_v40 }
 0x1e6   :  { %2768 = vmatpush1.bf16.msra.mxu0 %v3772_v42  ;;  %2932 = vmatpush1.bf16.msra.mxu1 %v3775_v43  ;;  %v2977_v42 = vunpack.c.l.bf16 %v2976_v17  ;;  %v1341_v43 = vrot.slane %v1336_v41, %v4018_v12 }
 0x1e7   :  { %2769 = vmatprep.subr.bf16.mxu0 %v3780_v44  ;;  %2933 = vmatprep.subr.bf16.mxu1 %v3783_v45  ;;  %v1349_v44 = vrot.slane %v1336_v41, %v4043_v3  ;;  %v1345_v45 = vrot.slane %v1336_v41, %v209_v20 }
 0x1ea   :  { %2770 = vmatpush1.bf16.msra.mxu0 %v3778_v47  ;;  %2934 = vmatpush1.bf16.msra.mxu1 %v3781_v48  ;;  %v1353_v47 = vrot.slane %v1336_v41, %v217_v28  ;;  %v2990_v48 = vrot.slane %v2977_v42, %v221_v57 }
 0x1eb   :  { %2771 = vmatprep.subr.bf16.mxu0 %v3786_v49  ;;  %2935 = vmatprep.subr.bf16.mxu1 %v3789_v50  ;;  %v2982_v49 = vrot.slane %v2977_v42, %v4018_v12 }
 0x1ed   :  { %v3002_v28 = vrot.slane %v2982_v49, %v4018_v12 }
 0x1ee   :  { %2772 = vmatpush1.bf16.msra.mxu0 %v3784_v36  ;;  %2936 = vmatpush1.bf16.msra.mxu1 %v3787_v25  ;;  %v2967_v36 = vstv %s3427_s17 }
 0x1ef   :  { %2773 = vmatprep.subr.bf16.mxu0 %v3792_v51  ;;  %2937 = vmatprep.subr.bf16.mxu1 %v3795_v52  ;;  %v2986_v51 = vrot.slane %v2977_v42, %v4043_v3 }
 0x1f2   :  { %2774 = vmatpush1.bf16.msra.mxu0 %v3790_v53  ;;  %2938 = vmatpush1.bf16.msra.mxu1 %v3793_v54 }
 0x1f3   :  { %2775 = vmatprep.subr.bf16.mxu0 %v3798_v55  ;;  %2939 = vmatprep.subr.bf16.mxu1 %v3801_v56 }
 0x1f6   :  { %2776 = vmatpush1.bf16.msra.mxu0 %v3796_v58  ;;  %2940 = vmatpush1.bf16.msra.mxu1 %v3799_v59 }
 0x1f7   :  { %2777 = vmatprep.subr.bf16.mxu0 %v3804_v60  ;;  %2941 = vmatprep.subr.bf16.mxu1 %v3807_v61 }
 0x1fa   :  { %2778 = vmatpush1.bf16.msra.mxu0 %v3802_v62  ;;  %2942 = vmatpush1.bf16.msra.mxu1 %v3805_v63  ;;  %v3010_v63 = vrot.slane %v2990_v48, %v4018_v12 }
 0x1fb   :  { %2779 = vmatprep.subr.bf16.mxu0 %v3810_v0  ;;  %2943 = vmatprep.subr.bf16.mxu1 %v3813_v2  ;;  %v3006_v2 = vrot.slane %v2986_v51, %v4018_v12 }
 0x1fe   :  { %2780 = vmatpush1.bf16.msra.mxu0 %v3808_v4  ;;  %2944 = vmatpush1.bf16.msra.mxu1 %v3811_v6  ;;  %v2994_v4 = vrot.slane %v2977_v42, %v229_v19 }
 0x1ff   :  { %2781 = vmatprep.subr.bf16.mxu0 %v3816_v7  ;;  %2945 = vmatprep.subr.bf16.mxu1 %v3819_v8 }
 0x202   :  { %2782 = vmatpush1.bf16.msra.mxu0 %v3814_v9  ;;  %2946 = vmatpush1.bf16.msra.mxu1 %v3817_v10 }
 0x203   :  { %2783 = vmatprep.subr.bf16.mxu0 %v3822_v14  ;;  %2947 = vmatprep.subr.bf16.mxu1 %v3825_v15 }
 0x206   :  { %2784 = vmatpush1.bf16.msra.mxu0 %v3820_v16  ;;  %2948 = vmatpush1.bf16.msra.mxu1 %v3823_v18  ;;  %v3014_v16 = vrot.slane %v2994_v4, %v4018_v12 }
 0x207   :  { %2785 = vmatprep.subr.bf16.mxu0 %v3828_v46  ;;  %2949 = vmatprep.subr.bf16.mxu1 %v3831_v21 }
 0x20a   :  { %2786 = vmatpush1.bf16.msra.mxu0 %v3826_v22  ;;  %2950 = vmatpush1.bf16.msra.mxu1 %v3829_v5  ;;  %v3428_v5 = vld [vmem:[#allocation2] ss:$0 sm:$0xff] }
 0x20b   :  { %2787 = vmatprep.subr.bf16.mxu0 %v3834_v24  ;;  %2951 = vmatprep.subr.bf16.mxu1 %v3837_v26 }
 0x20e   :  { %2788 = vmatpush1.bf16.msra.mxu0 %v3832_v27  ;;  %2952 = vmatpush1.bf16.msra.mxu1 %v3835_v29 }
 0x20f   :  { %2789 = vmatprep.subr.bf16.mxu0 %v3840_v31  ;;  %2953 = vmatprep.subr.bf16.mxu1 %v3843_v32 }
 0x212   :  { %2790 = vmatpush1.bf16.msra.mxu0 %v3838_v33  ;;  %2954 = vmatpush1.bf16.msra.mxu1 %v3841_v34 }
 0x213   :  { %2791 = vmatprep.subr.bf16.mxu0 %v3846_v35  ;;  %2955 = vmatprep.subr.bf16.mxu1 %v3849_v37 }
 0x216   :  { %2792 = vmatpush1.bf16.msra.mxu0 %v3844_v38  ;;  %2956 = vmatpush1.bf16.msra.mxu1 %v3847_v39 }
 0x219   :  { %2794 = vmatmul.mubr.bf16.vlgmr.msra.gmra.mrb[8].mxu0 %v1078_v1  ;;  %2958 = vmatmul.mubr.bf16.vlgmr.msra.gmra.mrb[8].mxu1 %v1078_v1 }
 0x2ec   :  { %v2795_v50 = vpop.f32.mrb[8].mxu0  ;;  %v2959_v25 = vpop.f32.mrb[8].mxu1 }
 0x2ed   :  { %v3429_v52 = vadd.f32 %v2795_v50, %v1341_v43  ;;  %v3431_v53 = vadd.f32 %v2959_v25, %v1349_v44  ;;  %v2797_v54 = vpop.f32.mrb[9].mxu0  ;;  %v2961_v55 = vpop.f32.mrb[9].mxu1 }
 0x2ee   :  { %v3430_v56 = vadd.f32 %v2797_v54, %v1345_v45  ;;  %v3432_v58 = vadd.f32 %v2961_v55, %v1353_v47  ;;  %v2799_v20 = vpop.f32.mrb[10].mxu0  ;;  %v2963_v59 = vpop.f32.mrb[10].mxu1 }
 0x2ef   :  { %v2968_v60 = vmul.f32 %v3429_v52, %v2967_v36  ;;  %v2970_v61 = vmul.f32 %v3431_v53, %v2967_v36  ;;  %v2800_v57 = vpop.f32.mrb[11].mxu0  ;;  %v2964_v62 = vpop.f32.mrb[11].mxu1 }
 0x2f0   :  { %v2969_v0 = vmul.f32 %v3430_v56, %v2967_v36  ;;  %v2971_v3 = vmul.f32 %v3432_v58, %v2967_v36 }
 0x2f1   :  { %v2972_v6 = vmax.f32 %v3429_v52, %v2968_v60  ;;  %v2974_v7 = vmax.f32 %v3431_v53, %v2970_v61 }
 0x2f2   :  { %v2973_v8 = vmax.f32 %v3430_v56, %v2969_v0  ;;  %v2975_v15 = vmax.f32 %v3432_v58, %v2971_v3 }
 0x2f3   :  { %v3015_v9 = vmul.f32 %v3002_v28, %v2972_v6  ;;  %v3017_v10 = vmul.f32 %v3010_v63, %v2974_v7 }
 0x2f4   :  { %v3016_v14 = vmul.f32 %v3006_v2, %v2973_v8  ;;  %v3018_v46 = vmul.f32 %v3014_v16, %v2975_v15 }
 0x2f6   :  { %v3019_v18 = vadd.f32 %v3016_v14, %v3015_v9 }
 0x2f8   :  { %v3020_v21 = vadd.f32 %v3019_v18, %v3017_v10 }
 0x2fa   :  { %v3021_v22 = vadd.f32 %v3020_v21, %v3018_v46 }
 0x2fc   :  { %3022 = vadd.xlane.f32.xlu0 %v3021_v22 }
 0x389   :  { %v3023_v23 = vpop.xlane.xlu0 %3022 }
 0x38a   :  { %v3031_v24 = vadd.f32 %v3428_v5, %v3023_v23 }
 0x38c   :  { %3033 = vst.msk [vmem:[%s4107_s8] sm:$0xff] %vm3032_vm0, %v3031_v24 }
 0x38d   :  { %3038 = vsyncpa [#allocation4], 1 }
 0x38e   :  { %3039 = vsyncpa [#allocation8], 1 }
 0x38f   :  { %3040 = vsyncpa [#allocation5], 1 }

</bundles_post_ra>
